<compile_context>
chip_gen: v7x
topology: tpu7x:2x2x1
jax: 0.10.0
libtpu: 0.0.40
codegen_flags: <defaults>
</compile_context>

<pallas_src>
import functools

import jax
import jax.numpy as jnp
from jax.experimental import pallas as pl
from jax.experimental.pallas import tpu as pltpu


def _ws_stack_kernel(x_ref, w_ref, b_ref, o_ref, *, num_layers, elt_dtype):
    """One (TILE_N, D) pixel-row tile: L x (WS 1x1-conv -> bias -> ReLU).

    x_ref : (TILE_N, D) f32        pixel rows, channel dim on lanes
    w_ref : (L, D, D)   bf16       stacked weights, WS scale pre-folded, (in, out)
    b_ref : (L, D)      elt_dtype  stacked biases
    o_ref : (TILE_N, D) f32
    """
    h = x_ref[...].astype(elt_dtype)
    for l in range(num_layers):            # small static L -> unroll, LLO visibility
        # bf16 operands on the MXU, f32 accumulation.
        y = jnp.dot(h.astype(jnp.bfloat16), w_ref[l],
                    preferred_element_type=jnp.float32)
        # Per-layer bias load straight from VMEM (vld slots have slack); avoids a
        # hoisted (L, D) vreg slab + per-layer cross-sublane extract.
        b_l = b_ref[pl.ds(l, 1), :]                        # (1, D) elt_dtype
        # Bias-add + ReLU in elt_dtype (bf16 on v6e/v7x, f32 on v5e).
        h = jnp.maximum(y.astype(elt_dtype) + b_l, 0.0)
    o_ref[...] = h.astype(o_ref.dtype)


def _pick_tile_n(n_rows, max_tile=1024):
    """Largest sublane-aligned divisor of n_rows <= max_tile that still leaves
    >= 2 grid steps when possible (keeps both v7x TensorCores busy)."""
    cands = [t for t in range(8, min(max_tile, n_rows) + 1, 8) if n_rows % t == 0]
    if not cands:
        return n_rows                       # block == full dim is always legal
    multi = [t for t in cands if n_rows // t >= 2]
    return max(multi) if multi else max(cands)


def _elementwise_dtype():
    """bf16 VPU path exists on v6e / v7x; v5e (and older) keep elementwise f32."""
    try:
        kind = jax.devices()[0].device_kind.lower()
    except Exception:
        return jnp.float32
    return jnp.bfloat16 if any(t in kind for t in ("v6", "v7", "7x")) else jnp.float32


def ws_stack_pallas(x_rows, weights_bf16, biases, *, elt_dtype=jnp.float32,
                    tile_n=None, single_buffer_params=True):
    """x_rows: (N, D) f32; weights_bf16: (L, D, D) bf16 (scale folded);
    biases: (L, D) in elt_dtype."""
    N, D = x_rows.shape
    L = weights_bf16.shape[0]
    assert D % 128 == 0, "channel dim must be lane-dense (multiple of 128)"
    if tile_n is None:
        tile_n = _pick_tile_n(N)
    assert N % tile_n == 0, "N must be a multiple of tile_n"

    kernel = functools.partial(_ws_stack_kernel, num_layers=L, elt_dtype=elt_dtype)

    def build(use_single_buffer):
        # Weights / biases have a constant index_map -> fetched once and kept
        # VMEM-resident across all batch-tile grid steps; single-buffering them
        # drops the useless second pipeline buffer.
        param_kwargs = dict(pipeline_mode=pl.Buffered(1)) if use_single_buffer else {}
        return pl.pallas_call(
            kernel,
            out_shape=jax.ShapeDtypeStruct((N, D), x_rows.dtype),
            grid=(N // tile_n,),
            in_specs=[
                pl.BlockSpec((tile_n, D), lambda i: (i, 0)),
                pl.BlockSpec((L, D, D), lambda i: (0, 0, 0), **param_kwargs),
                pl.BlockSpec((L, D), lambda i: (0, 0), **param_kwargs),
            ],
            out_specs=pl.BlockSpec((tile_n, D), lambda i: (i, 0)),
            compiler_params=pltpu.CompilerParams(
                dimension_semantics=("parallel",),   # megacore: shard row tiles
                vmem_limit_bytes=32 << 20,           # safe on v7x's 64 MiB/TC
            ),
        )

    try:
        return build(single_buffer_params)(x_rows, weights_bf16, biases)
    except Exception:
        if not single_buffer_params:
            raise
        # TODO(synk): remove fallback once pl.Buffered(1) on top-level BlockSpecs
        # is confirmed on the target jax/libtpu build.
        return build(False)(x_rows, weights_bf16, biases)


def discriminator_ws_relu_stack(x_img, weights_bf16, biases, *, elt_dtype):
    """Stack of L x (WS 1x1-Conv2d -> ReLU) over an NCHW image via the kernel."""
    B, C, H, W = x_img.shape
    rows = jnp.transpose(x_img, (0, 2, 3, 1)).reshape(B * H * W, C)
    out_rows = ws_stack_pallas(rows, weights_bf16, biases, elt_dtype=elt_dtype)
    return jnp.transpose(out_rows.reshape(B, H, W, C), (0, 3, 1, 2))


def ws_stack_reference(x_rows, weights_bf16, biases, elt_dtype):
    """Pure-JAX reference using the identical mixed-precision math."""
    h = x_rows.astype(elt_dtype)
    for l in range(weights_bf16.shape[0]):
        y = jnp.dot(h.astype(jnp.bfloat16), weights_bf16[l],
                    preferred_element_type=jnp.float32)
        h = jnp.maximum(y.astype(elt_dtype) + biases[l][None, :], 0.0)
    return h.astype(jnp.float32)


def prepare_ws_params(w_pt, b_pt, *, elt_dtype):
    """PyTorch-layout WS 1x1-conv params -> kernel layout.

    w_pt : (L, out, in) f32, N(0,1) init (Conv2d k=1 weight, spatial dims squeezed)
    b_pt : (L, out)     f32 (module init is zeros)
    Folds the WS scale sqrt(2 / (in_ch * 1^2)) into the weights, casts to bf16,
    and casts biases to the elementwise dtype.
    """
    in_ch = w_pt.shape[2]
    scale = (2.0 / in_ch) ** 0.5
    w = jnp.transpose(w_pt, (0, 2, 1)) * scale         # (L, in, out), scale folded
    return w.astype(jnp.bfloat16), b_pt.astype(elt_dtype)


if __name__ == "__main__":
    B, C, H, W = 4, 128, 8, 8      # 4*8*8 = 256 pixel rows -> 2 grid steps of 128
    L = 7                          # number of WS(1x1 conv) -> ReLU layers

    key = jax.random.PRNGKey(0)
    kx, kw, kb = jax.random.split(key, 3)

    x = jax.random.normal(kx, (B, C, H, W), dtype=jnp.float32)
    # WS init: nn.init.normal_(weight) -> N(0, 1); biases random here (module
    # init is zeros) so the bias-add path is actually exercised.
    w_pt = jax.random.normal(kw, (L, C, C), dtype=jnp.float32)       # (L, out, in)
    b_pt = 0.1 * jax.random.normal(kb, (L, C), dtype=jnp.float32)

    elt_dtype = _elementwise_dtype()
    weights_bf16, biases = prepare_ws_params(w_pt, b_pt, elt_dtype=elt_dtype)

    out = discriminator_ws_relu_stack(x, weights_bf16, biases, elt_dtype=elt_dtype)
    out = jax.block_until_ready(out)

    rows = jnp.transpose(x, (0, 2, 3, 1)).reshape(B * H * W, C)
    ref_rows = ws_stack_reference(rows, weights_bf16, biases, elt_dtype)
    ref = jnp.transpose(ref_rows.reshape(B, H, W, C), (0, 3, 1, 2))

    assert out.shape == (B, C, H, W)
    assert jnp.allclose(out, ref, atol=2e-2, rtol=2e-2), "mismatch vs reference"

    print("KERNEL_OK")
</pallas_src>

<mosaic_0001>
module attributes {stable_mosaic.version = 11 : i64} {
  func.func @_ws_stack_kernel(%arg0: i32, %arg1: memref<128x128xf32, #tpu.memory_space<vmem>>, %arg2: memref<7x128x128xbf16, #tpu.memory_space<vmem>>, %arg3: memref<7x128xf32, #tpu.memory_space<vmem>>, %arg4: memref<128x128xf32, #tpu.memory_space<vmem>>) attributes {dimension_semantics = [#tpu.dimension_semantics<parallel>], iteration_bounds = array<i64: 2>, scalar_prefetch = 0 : i64, scratch_operands = 0 : i64, tpu.core_type = #tpu.core_type<tc>, window_params = [{transform_indices = @transform_0, window_bounds = array<i64: 128, 128>}, {pipeline_mode = #tpu.pipeline_mode<synchronous>, transform_indices = @transform_1, window_bounds = array<i64: 7, 128, 128>}, {pipeline_mode = #tpu.pipeline_mode<synchronous>, transform_indices = @transform_2, window_bounds = array<i64: 7, 128>}, {transform_indices = @transform_3, window_bounds = array<i64: 128, 128>}]} {
    %c0 = arith.constant 0 : index
    %c0_0 = arith.constant 0 : index
    %0 = vector.load %arg1[%c0, %c0_0] : memref<128x128xf32, #tpu.memory_space<vmem>>, vector<128x128xf32>
    %1 = arith.truncf %0 : vector<128x128xf32> to vector<128x128xbf16>
    %c0_1 = arith.constant 0 : index
    %c0_2 = arith.constant 0 : index
    %c0_3 = arith.constant 0 : index
    %2 = vector.load %arg2[%c0_1, %c0_2, %c0_3] : memref<7x128x128xbf16, #tpu.memory_space<vmem>>, vector<1x128x128xbf16>
    %3 = vector.shape_cast %2 : vector<1x128x128xbf16> to vector<128x128xbf16>
    %cst = arith.constant dense<0.000000e+00> : vector<128x128xf32>
    %4 = tpu.matmul %1, %3, %cst {dimension_numbers = #tpu.dot_dimension_numbers<[1], [0], [0], [1], [0, 0, 1, 1], [], []>} : vector<128x128xbf16>, vector<128x128xbf16>, vector<128x128xf32> -> vector<128x128xf32>
    %c0_4 = arith.constant 0 : index
    %c0_5 = arith.constant 0 : index
    %5 = vector.load %arg3[%c0_4, %c0_5] : memref<7x128xf32, #tpu.memory_space<vmem>>, vector<1x128xf32>
    %6 = vector.broadcast %5 : vector<1x128xf32> to vector<128x128xf32>
    %7 = arith.addf %4, %6 : vector<128x128xf32>
    %cst_6 = arith.constant 0.000000e+00 : f32
    %8 = vector.broadcast %cst_6 : f32 to vector<128x128xf32>
    %9 = arith.maximumf %7, %8 : vector<128x128xf32>
    %10 = arith.truncf %9 : vector<128x128xf32> to vector<128x128xbf16>
    %c1 = arith.constant 1 : index
    %c0_7 = arith.constant 0 : index
    %c0_8 = arith.constant 0 : index
    %11 = vector.load %arg2[%c1, %c0_7, %c0_8] : memref<7x128x128xbf16, #tpu.memory_space<vmem>>, vector<1x128x128xbf16>
    %12 = vector.shape_cast %11 : vector<1x128x128xbf16> to vector<128x128xbf16>
    %cst_9 = arith.constant dense<0.000000e+00> : vector<128x128xf32>
    %13 = tpu.matmul %10, %12, %cst_9 {dimension_numbers = #tpu.dot_dimension_numbers<[1], [0], [0], [1], [0, 0, 1, 1], [], []>} : vector<128x128xbf16>, vector<128x128xbf16>, vector<128x128xf32> -> vector<128x128xf32>
    %c1_10 = arith.constant 1 : index
    %c0_11 = arith.constant 0 : index
    %14 = vector.load %arg3[%c1_10, %c0_11] : memref<7x128xf32, #tpu.memory_space<vmem>>, vector<1x128xf32>
    %15 = vector.broadcast %14 : vector<1x128xf32> to vector<128x128xf32>
    %16 = arith.addf %13, %15 : vector<128x128xf32>
    %cst_12 = arith.constant 0.000000e+00 : f32
    %17 = vector.broadcast %cst_12 : f32 to vector<128x128xf32>
    %18 = arith.maximumf %16, %17 : vector<128x128xf32>
    %19 = arith.truncf %18 : vector<128x128xf32> to vector<128x128xbf16>
    %c2 = arith.constant 2 : index
    %c0_13 = arith.constant 0 : index
    %c0_14 = arith.constant 0 : index
    %20 = vector.load %arg2[%c2, %c0_13, %c0_14] : memref<7x128x128xbf16, #tpu.memory_space<vmem>>, vector<1x128x128xbf16>
    %21 = vector.shape_cast %20 : vector<1x128x128xbf16> to vector<128x128xbf16>
    %cst_15 = arith.constant dense<0.000000e+00> : vector<128x128xf32>
    %22 = tpu.matmul %19, %21, %cst_15 {dimension_numbers = #tpu.dot_dimension_numbers<[1], [0], [0], [1], [0, 0, 1, 1], [], []>} : vector<128x128xbf16>, vector<128x128xbf16>, vector<128x128xf32> -> vector<128x128xf32>
    %c2_16 = arith.constant 2 : index
    %c0_17 = arith.constant 0 : index
    %23 = vector.load %arg3[%c2_16, %c0_17] : memref<7x128xf32, #tpu.memory_space<vmem>>, vector<1x128xf32>
    %24 = vector.broadcast %23 : vector<1x128xf32> to vector<128x128xf32>
    %25 = arith.addf %22, %24 : vector<128x128xf32>
    %cst_18 = arith.constant 0.000000e+00 : f32
    %26 = vector.broadcast %cst_18 : f32 to vector<128x128xf32>
    %27 = arith.maximumf %25, %26 : vector<128x128xf32>
    %28 = arith.truncf %27 : vector<128x128xf32> to vector<128x128xbf16>
    %c3 = arith.constant 3 : index
    %c0_19 = arith.constant 0 : index
    %c0_20 = arith.constant 0 : index
    %29 = vector.load %arg2[%c3, %c0_19, %c0_20] : memref<7x128x128xbf16, #tpu.memory_space<vmem>>, vector<1x128x128xbf16>
    %30 = vector.shape_cast %29 : vector<1x128x128xbf16> to vector<128x128xbf16>
    %cst_21 = arith.constant dense<0.000000e+00> : vector<128x128xf32>
    %31 = tpu.matmul %28, %30, %cst_21 {dimension_numbers = #tpu.dot_dimension_numbers<[1], [0], [0], [1], [0, 0, 1, 1], [], []>} : vector<128x128xbf16>, vector<128x128xbf16>, vector<128x128xf32> -> vector<128x128xf32>
    %c3_22 = arith.constant 3 : index
    %c0_23 = arith.constant 0 : index
    %32 = vector.load %arg3[%c3_22, %c0_23] : memref<7x128xf32, #tpu.memory_space<vmem>>, vector<1x128xf32>
    %33 = vector.broadcast %32 : vector<1x128xf32> to vector<128x128xf32>
    %34 = arith.addf %31, %33 : vector<128x128xf32>
    %cst_24 = arith.constant 0.000000e+00 : f32
    %35 = vector.broadcast %cst_24 : f32 to vector<128x128xf32>
    %36 = arith.maximumf %34, %35 : vector<128x128xf32>
    %37 = arith.truncf %36 : vector<128x128xf32> to vector<128x128xbf16>
    %c4 = arith.constant 4 : index
    %c0_25 = arith.constant 0 : index
    %c0_26 = arith.constant 0 : index
    %38 = vector.load %arg2[%c4, %c0_25, %c0_26] : memref<7x128x128xbf16, #tpu.memory_space<vmem>>, vector<1x128x128xbf16>
    %39 = vector.shape_cast %38 : vector<1x128x128xbf16> to vector<128x128xbf16>
    %cst_27 = arith.constant dense<0.000000e+00> : vector<128x128xf32>
    %40 = tpu.matmul %37, %39, %cst_27 {dimension_numbers = #tpu.dot_dimension_numbers<[1], [0], [0], [1], [0, 0, 1, 1], [], []>} : vector<128x128xbf16>, vector<128x128xbf16>, vector<128x128xf32> -> vector<128x128xf32>
    %c4_28 = arith.constant 4 : index
    %c0_29 = arith.constant 0 : index
    %41 = vector.load %arg3[%c4_28, %c0_29] : memref<7x128xf32, #tpu.memory_space<vmem>>, vector<1x128xf32>
    %42 = vector.broadcast %41 : vector<1x128xf32> to vector<128x128xf32>
    %43 = arith.addf %40, %42 : vector<128x128xf32>
    %cst_30 = arith.constant 0.000000e+00 : f32
    %44 = vector.broadcast %cst_30 : f32 to vector<128x128xf32>
    %45 = arith.maximumf %43, %44 : vector<128x128xf32>
    %46 = arith.truncf %45 : vector<128x128xf32> to vector<128x128xbf16>
    %c5 = arith.constant 5 : index
    %c0_31 = arith.constant 0 : index
    %c0_32 = arith.constant 0 : index
    %47 = vector.load %arg2[%c5, %c0_31, %c0_32] : memref<7x128x128xbf16, #tpu.memory_space<vmem>>, vector<1x128x128xbf16>
    %48 = vector.shape_cast %47 : vector<1x128x128xbf16> to vector<128x128xbf16>
    %cst_33 = arith.constant dense<0.000000e+00> : vector<128x128xf32>
    %49 = tpu.matmul %46, %48, %cst_33 {dimension_numbers = #tpu.dot_dimension_numbers<[1], [0], [0], [1], [0, 0, 1, 1], [], []>} : vector<128x128xbf16>, vector<128x128xbf16>, vector<128x128xf32> -> vector<128x128xf32>
    %c5_34 = arith.constant 5 : index
    %c0_35 = arith.constant 0 : index
    %50 = vector.load %arg3[%c5_34, %c0_35] : memref<7x128xf32, #tpu.memory_space<vmem>>, vector<1x128xf32>
    %51 = vector.broadcast %50 : vector<1x128xf32> to vector<128x128xf32>
    %52 = arith.addf %49, %51 : vector<128x128xf32>
    %cst_36 = arith.constant 0.000000e+00 : f32
    %53 = vector.broadcast %cst_36 : f32 to vector<128x128xf32>
    %54 = arith.maximumf %52, %53 : vector<128x128xf32>
    %55 = arith.truncf %54 : vector<128x128xf32> to vector<128x128xbf16>
    %c6 = arith.constant 6 : index
    %c0_37 = arith.constant 0 : index
    %c0_38 = arith.constant 0 : index
    %56 = vector.load %arg2[%c6, %c0_37, %c0_38] : memref<7x128x128xbf16, #tpu.memory_space<vmem>>, vector<1x128x128xbf16>
    %57 = vector.shape_cast %56 : vector<1x128x128xbf16> to vector<128x128xbf16>
    %cst_39 = arith.constant dense<0.000000e+00> : vector<128x128xf32>
    %58 = tpu.matmul %55, %57, %cst_39 {dimension_numbers = #tpu.dot_dimension_numbers<[1], [0], [0], [1], [0, 0, 1, 1], [], []>} : vector<128x128xbf16>, vector<128x128xbf16>, vector<128x128xf32> -> vector<128x128xf32>
    %c6_40 = arith.constant 6 : index
    %c0_41 = arith.constant 0 : index
    %59 = vector.load %arg3[%c6_40, %c0_41] : memref<7x128xf32, #tpu.memory_space<vmem>>, vector<1x128xf32>
    %60 = vector.broadcast %59 : vector<1x128xf32> to vector<128x128xf32>
    %61 = arith.addf %58, %60 : vector<128x128xf32>
    %cst_42 = arith.constant 0.000000e+00 : f32
    %62 = vector.broadcast %cst_42 : f32 to vector<128x128xf32>
    %63 = arith.maximumf %61, %62 : vector<128x128xf32>
    %c0_43 = arith.constant 0 : index
    %c0_44 = arith.constant 0 : index
    %64 = vector.load %arg4[%c0_43, %c0_44] : memref<128x128xf32, #tpu.memory_space<vmem>>, vector<128x128xf32>
    tpu.vector_store %arg4[%c0_43, %c0_44], %63 {strides = array<i32>} : memref<128x128xf32, #tpu.memory_space<vmem>>, vector<128x128xf32>,
    return
  }
  func.func @transform_0(%arg0: i32) -> (i32, i32) {
    %c0_i32 = arith.constant 0 : i32
    %c0_i32_0 = arith.constant 0 : i32
    return %arg0, %c0_i32 : i32, i32
  }
  func.func @transform_1(%arg0: i32) -> (i32, i32, i32) {
    %c0_i32 = arith.constant 0 : i32
    %c0_i32_0 = arith.constant 0 : i32
    %c0_i32_1 = arith.constant 0 : i32
    %c0_i32_2 = arith.constant 0 : i32
    return %c0_i32, %c0_i32_0, %c0_i32_1 : i32, i32, i32
  }
  func.func @transform_2(%arg0: i32) -> (i32, i32) {
    %c0_i32 = arith.constant 0 : i32
    %c0_i32_0 = arith.constant 0 : i32
    %c0_i32_1 = arith.constant 0 : i32
    return %c0_i32, %c0_i32_0 : i32, i32
  }
  func.func @transform_3(%arg0: i32) -> (i32, i32) {
    %c0_i32 = arith.constant 0 : i32
    %c0_i32_0 = arith.constant 0 : i32
    return %arg0, %c0_i32 : i32, i32
  }
}

module attributes {stable_mosaic.version = 11 : i64} {
  func.func @_ws_stack_kernel(%arg0: i32, %arg1: memref<128x128xf32, #tpu.memory_space<vmem>>, %arg2: memref<7x128x128xbf16, #tpu.memory_space<vmem>>, %arg3: memref<7x128xf32, #tpu.memory_space<vmem>>, %arg4: memref<128x128xf32, #tpu.memory_space<vmem>>) attributes {dimension_semantics = [#tpu.dimension_semantics<parallel>], iteration_bounds = array<i64: 2>, scalar_prefetch = 0 : i64, scratch_operands = 0 : i64, tpu.core_type = #tpu.core_type<tc>, window_params = [{transform_indices = @transform_0, window_bounds = array<i64: 128, 128>}, {pipeline_mode = #tpu.pipeline_mode<synchronous>, transform_indices = @transform_1, window_bounds = array<i64: 7, 128, 128>}, {pipeline_mode = #tpu.pipeline_mode<synchronous>, transform_indices = @transform_2, window_bounds = array<i64: 7, 128>}, {transform_indices = @transform_3, window_bounds = array<i64: 128, 128>}]} {
    %c0 = arith.constant 0 : index
    %c0_0 = arith.constant 0 : index
    %0 = vector.load %arg1[%c0, %c0_0] : memref<128x128xf32, #tpu.memory_space<vmem>>, vector<128x128xf32>
    %1 = arith.truncf %0 : vector<128x128xf32> to vector<128x128xbf16>
    %c0_1 = arith.constant 0 : index
    %c0_2 = arith.constant 0 : index
    %c0_3 = arith.constant 0 : index
    %2 = vector.load %arg2[%c0_1, %c0_2, %c0_3] : memref<7x128x128xbf16, #tpu.memory_space<vmem>>, vector<1x128x128xbf16>
    %3 = vector.shape_cast %2 : vector<1x128x128xbf16> to vector<128x128xbf16>
    %cst = arith.constant dense<0.000000e+00> : vector<128x128xf32>
    %4 = tpu.matmul %1, %3, %cst {dimension_numbers = #tpu.dot_dimension_numbers<[1], [0], [0], [1], [0, 0, 1, 1], [], []>} : vector<128x128xbf16>, vector<128x128xbf16>, vector<128x128xf32> -> vector<128x128xf32>
    %c0_4 = arith.constant 0 : index
    %c0_5 = arith.constant 0 : index
    %5 = vector.load %arg3[%c0_4, %c0_5] : memref<7x128xf32, #tpu.memory_space<vmem>>, vector<1x128xf32>
    %6 = vector.broadcast %5 : vector<1x128xf32> to vector<128x128xf32>
    %7 = arith.addf %4, %6 : vector<128x128xf32>
    %cst_6 = arith.constant 0.000000e+00 : f32
    %8 = vector.broadcast %cst_6 : f32 to vector<128x128xf32>
    %9 = arith.maximumf %7, %8 : vector<128x128xf32>
    %10 = arith.truncf %9 : vector<128x128xf32> to vector<128x128xbf16>
    %c1 = arith.constant 1 : index
    %c0_7 = arith.constant 0 : index
    %c0_8 = arith.constant 0 : index
    %11 = vector.load %arg2[%c1, %c0_7, %c0_8] : memref<7x128x128xbf16, #tpu.memory_space<vmem>>, vector<1x128x128xbf16>
    %12 = vector.shape_cast %11 : vector<1x128x128xbf16> to vector<128x128xbf16>
    %cst_9 = arith.constant dense<0.000000e+00> : vector<128x128xf32>
    %13 = tpu.matmul %10, %12, %cst_9 {dimension_numbers = #tpu.dot_dimension_numbers<[1], [0], [0], [1], [0, 0, 1, 1], [], []>} : vector<128x128xbf16>, vector<128x128xbf16>, vector<128x128xf32> -> vector<128x128xf32>
    %c1_10 = arith.constant 1 : index
    %c0_11 = arith.constant 0 : index
    %14 = vector.load %arg3[%c1_10, %c0_11] : memref<7x128xf32, #tpu.memory_space<vmem>>, vector<1x128xf32>
    %15 = vector.broadcast %14 : vector<1x128xf32> to vector<128x128xf32>
    %16 = arith.addf %13, %15 : vector<128x128xf32>
    %cst_12 = arith.constant 0.000000e+00 : f32
    %17 = vector.broadcast %cst_12 : f32 to vector<128x128xf32>
    %18 = arith.maximumf %16, %17 : vector<128x128xf32>
    %19 = arith.truncf %18 : vector<128x128xf32> to vector<128x128xbf16>
    %c2 = arith.constant 2 : index
    %c0_13 = arith.constant 0 : index
    %c0_14 = arith.constant 0 : index
    %20 = vector.load %arg2[%c2, %c0_13, %c0_14] : memref<7x128x128xbf16, #tpu.memory_space<vmem>>, vector<1x128x128xbf16>
    %21 = vector.shape_cast %20 : vector<1x128x128xbf16> to vector<128x128xbf16>
    %cst_15 = arith.constant dense<0.000000e+00> : vector<128x128xf32>
    %22 = tpu.matmul %19, %21, %cst_15 {dimension_numbers = #tpu.dot_dimension_numbers<[1], [0], [0], [1], [0, 0, 1, 1], [], []>} : vector<128x128xbf16>, vector<128x128xbf16>, vector<128x128xf32> -> vector<128x128xf32>
    %c2_16 = arith.constant 2 : index
    %c0_17 = arith.constant 0 : index
    %23 = vector.load %arg3[%c2_16, %c0_17] : memref<7x128xf32, #tpu.memory_space<vmem>>, vector<1x128xf32>
    %24 = vector.broadcast %23 : vector<1x128xf32> to vector<128x128xf32>
    %25 = arith.addf %22, %24 : vector<128x128xf32>
    %cst_18 = arith.constant 0.000000e+00 : f32
    %26 = vector.broadcast %cst_18 : f32 to vector<128x128xf32>
    %27 = arith.maximumf %25, %26 : vector<128x128xf32>
    %28 = arith.truncf %27 : vector<128x128xf32> to vector<128x128xbf16>
    %c3 = arith.constant 3 : index
    %c0_19 = arith.constant 0 : index
    %c0_20 = arith.constant 0 : index
    %29 = vector.load %arg2[%c3, %c0_19, %c0_20] : memref<7x128x128xbf16, #tpu.memory_space<vmem>>, vector<1x128x128xbf16>
    %30 = vector.shape_cast %29 : vector<1x128x128xbf16> to vector<128x128xbf16>
    %cst_21 = arith.constant dense<0.000000e+00> : vector<128x128xf32>
    %31 = tpu.matmul %28, %30, %cst_21 {dimension_numbers = #tpu.dot_dimension_numbers<[1], [0], [0], [1], [0, 0, 1, 1], [], []>} : vector<128x128xbf16>, vector<128x128xbf16>, vector<128x128xf32> -> vector<128x128xf32>
    %c3_22 = arith.constant 3 : index
    %c0_23 = arith.constant 0 : index
    %32 = vector.load %arg3[%c3_22, %c0_23] : memref<7x128xf32, #tpu.memory_space<vmem>>, vector<1x128xf32>
    %33 = vector.broadcast %32 : vector<1x128xf32> to vector<128x128xf32>
    %34 = arith.addf %31, %33 : vector<128x128xf32>
    %cst_24 = arith.constant 0.000000e+00 : f32
    %35 = vector.broadcast %cst_24 : f32 to vector<128x128xf32>
    %36 = arith.maximumf %34, %35 : vector<128x128xf32>
    %37 = arith.truncf %36 : vector<128x128xf32> to vector<128x128xbf16>
    %c4 = arith.constant 4 : index
    %c0_25 = arith.constant 0 : index
    %c0_26 = arith.constant 0 : index
    %38 = vector.load %arg2[%c4, %c0_25, %c0_26] : memref<7x128x128xbf16, #tpu.memory_space<vmem>>, vector<1x128x128xbf16>
    %39 = vector.shape_cast %38 : vector<1x128x128xbf16> to vector<128x128xbf16>
    %cst_27 = arith.constant dense<0.000000e+00> : vector<128x128xf32>
    %40 = tpu.matmul %37, %39, %cst_27 {dimension_numbers = #tpu.dot_dimension_numbers<[1], [0], [0], [1], [0, 0, 1, 1], [], []>} : vector<128x128xbf16>, vector<128x128xbf16>, vector<128x128xf32> -> vector<128x128xf32>
    %c4_28 = arith.constant 4 : index
    %c0_29 = arith.constant 0 : index
    %41 = vector.load %arg3[%c4_28, %c0_29] : memref<7x128xf32, #tpu.memory_space<vmem>>, vector<1x128xf32>
    %42 = vector.broadcast %41 : vector<1x128xf32> to vector<128x128xf32>
    %43 = arith.addf %40, %42 : vector<128x128xf32>
    %cst_30 = arith.constant 0.000000e+00 : f32
    %44 = vector.broadcast %cst_30 : f32 to vector<128x128xf32>
    %45 = arith.maximumf %43, %44 : vector<128x128xf32>
    %46 = arith.truncf %45 : vector<128x128xf32> to vector<128x128xbf16>
    %c5 = arith.constant 5 : index
    %c0_31 = arith.constant 0 : index
    %c0_32 = arith.constant 0 : index
    %47 = vector.load %arg2[%c5, %c0_31, %c0_32] : memref<7x128x128xbf16, #tpu.memory_space<vmem>>, vector<1x128x128xbf16>
    %48 = vector.shape_cast %47 : vector<1x128x128xbf16> to vector<128x128xbf16>
    %cst_33 = arith.constant dense<0.000000e+00> : vector<128x128xf32>
    %49 = tpu.matmul %46, %48, %cst_33 {dimension_numbers = #tpu.dot_dimension_numbers<[1], [0], [0], [1], [0, 0, 1, 1], [], []>} : vector<128x128xbf16>, vector<128x128xbf16>, vector<128x128xf32> -> vector<128x128xf32>
    %c5_34 = arith.constant 5 : index
    %c0_35 = arith.constant 0 : index
    %50 = vector.load %arg3[%c5_34, %c0_35] : memref<7x128xf32, #tpu.memory_space<vmem>>, vector<1x128xf32>
    %51 = vector.broadcast %50 : vector<1x128xf32> to vector<128x128xf32>
    %52 = arith.addf %49, %51 : vector<128x128xf32>
    %cst_36 = arith.constant 0.000000e+00 : f32
    %53 = vector.broadcast %cst_36 : f32 to vector<128x128xf32>
    %54 = arith.maximumf %52, %53 : vector<128x128xf32>
    %55 = arith.truncf %54 : vector<128x128xf32> to vector<128x128xbf16>
    %c6 = arith.constant 6 : index
    %c0_37 = arith.constant 0 : index
    %c0_38 = arith.constant 0 : index
    %56 = vector.load %arg2[%c6, %c0_37, %c0_38] : memref<7x128x128xbf16, #tpu.memory_space<vmem>>, vector<1x128x128xbf16>
    %57 = vector.shape_cast %56 : vector<1x128x128xbf16> to vector<128x128xbf16>
    %cst_39 = arith.constant dense<0.000000e+00> : vector<128x128xf32>
    %58 = tpu.matmul %55, %57, %cst_39 {dimension_numbers = #tpu.dot_dimension_numbers<[1], [0], [0], [1], [0, 0, 1, 1], [], []>} : vector<128x128xbf16>, vector<128x128xbf16>, vector<128x128xf32> -> vector<128x128xf32>
    %c6_40 = arith.constant 6 : index
    %c0_41 = arith.constant 0 : index
    %59 = vector.load %arg3[%c6_40, %c0_41] : memref<7x128xf32, #tpu.memory_space<vmem>>, vector<1x128xf32>
    %60 = vector.broadcast %59 : vector<1x128xf32> to vector<128x128xf32>
    %61 = arith.addf %58, %60 : vector<128x128xf32>
    %cst_42 = arith.constant 0.000000e+00 : f32
    %62 = vector.broadcast %cst_42 : f32 to vector<128x128xf32>
    %63 = arith.maximumf %61, %62 : vector<128x128xf32>
    %c0_43 = arith.constant 0 : index
    %c0_44 = arith.constant 0 : index
    %64 = vector.load %arg4[%c0_43, %c0_44] : memref<128x128xf32, #tpu.memory_space<vmem>>, vector<128x128xf32>
    tpu.vector_store %arg4[%c0_43, %c0_44], %63 {strides = array<i32>} : memref<128x128xf32, #tpu.memory_space<vmem>>, vector<128x128xf32>,
    return
  }
  func.func @transform_0(%arg0: i32) -> (i32, i32) {
    %c0_i32 = arith.constant 0 : i32
    %c0_i32_0 = arith.constant 0 : i32
    return %arg0, %c0_i32 : i32, i32
  }
  func.func @transform_1(%arg0: i32) -> (i32, i32, i32) {
    %c0_i32 = arith.constant 0 : i32
    %c0_i32_0 = arith.constant 0 : i32
    %c0_i32_1 = arith.constant 0 : i32
    %c0_i32_2 = arith.constant 0 : i32
    return %c0_i32, %c0_i32_0, %c0_i32_1 : i32, i32, i32
  }
  func.func @transform_2(%arg0: i32) -> (i32, i32) {
    %c0_i32 = arith.constant 0 : i32
    %c0_i32_0 = arith.constant 0 : i32
    %c0_i32_1 = arith.constant 0 : i32
    return %c0_i32, %c0_i32_0 : i32, i32
  }
  func.func @transform_3(%arg0: i32) -> (i32, i32) {
    %c0_i32 = arith.constant 0 : i32
    %c0_i32_0 = arith.constant 0 : i32
    return %arg0, %c0_i32 : i32, i32
  }
}

</mosaic_0001>

<bundles_post_ra>
// kernel: tpu_custom_call.1
= control target key start
LH: loop header
LB: loop body
LE: loop exit
PB: predicated region body
PF: predicated region fallthrough
CT: control target
= control target key end

     0   :  { %8 = vsyncpa [#allocation3], 0  ;;  %s2756_s0 = inlined_call_operand.hbm [shape: f32[256,128], index: 0, kind: input, shape index: {}]   ;;  %s2757_s1 = inlined_call_operand.hbm [shape: bf16[7,128,128], index: 1, kind: input, shape index: {}]   ;;  %s2758_s2 = inlined_call_operand.hbm [shape: f32[7,128], index: 2, kind: input, shape index: {}]   ;;  %s2759_s3 = inlined_call_operand.hbm [shape: f32[256,128], index: 3, kind: output, shape index: {}]  }
   0x1   :  { %10 = vsyncpa [#allocation3 + $0x1], 0 }
   0x2   :  { %11 = vsyncpa [#allocation6], 0 }
   0x3   :  { %12 = vsyncpa [#allocation4], 0 }
   0x4   :  { %14 = vsyncpa [#allocation4 + $0x1], 0  ;;  %s2445_s12 = smov 0   ;;  %s2447_s13 = smov 0  }
   0x5   :  { %s2449_s14 = smov 0   ;;  %s2451_s15 = smov 0  }
   0x6 LB: > { %s2466_s16 = sadd.s32 4294967295, %s2413_s15   ;;  %s1693_s17 = sadd.s32 4294967294, %s2413_s15   ;;  %s2413_s15 = sphi %s2451_s15, %s2779_s15   ;;  %s2409_s14 = sphi %s2449_s14, %s2778_s14   ;;  %s2405_s13 = sphi %s2447_s13, %s2777_s13   ;;  %s2401_s12 = sphi %s2445_s12, %s2776_s12  }
   0x7   : > { %p40_p0 = scmp.ne.s32.totalorder %s2405_s13, %s2401_s12  ;;  %p2760_p1 = scmp.eq.s32.totalorder %s2466_s16, 0 }
   0x8   : > { %p112_p3 = scmp.eq.s32.totalorder %s1693_s17, 1  ;;  %p1694_p5 = scmp.ge.s32.totalorder %s2413_s15, 1 }
   0x9   : > { %p2475_p4 = por %p2760_p1, %p40_p0  ;;  %p119_p7 = scmp.lt.s32.totalorder %s2413_s15, 3 }
   0xa   : > { %p2480_p6 = por %p112_p3, %p40_p0  ;;  %s2415_s21 = smov [#allocation5]  }
   0xb   : > { %s2763_s18 = scalar_select %p2475_p4, 1, 0 }
   0xc   : > { %s2764_s19 = scalar_select %p2480_p6, 1, 0 }
   0xd   : > { %p2485_p8 = pnand %p1694_p5, %p119_p7  ;;  %s131_s22 = sshll.u32 %s2415_s21, 4  ;;  %s2489_s22 = int_to_ptr.vmem [resolvable:$true] %s131_s22 }
   0xe   : > { %s2416_s24 = smov [#allocation7]   ;;  %s2257_s28 = scalar_lea.hbm %s2757_s1, 7168 }
   0xf   : > { %p2140_p9 = pneg %p2485_p8  ;;  %s145_s25 = sshll.u32 %s2416_s24, 4  ;;  %s2500_s25 = int_to_ptr.vmem [resolvable:$true] %s145_s25 }
  0x10   : > { %p2258_p12 = scmp.ne.s32.totalorder %s2757_s1, %s2257_s28  ;;  %p2264_p5 = scmp.lt.u32.totalorder %s2257_s28, %s2757_s1 }
  0x11   : > { %p2496_p11 = pnand %p2140_p9, %p2760_p1 }
  0x13   : > { %p2259_p13 = pneg %p2496_p11 }
  0x15   : > { %p2260_p0 = pnand %p2259_p13, %p2258_p12 }
  0x17   : > { %p2261_p3 = pneg %p2260_p0 }
  0x19   : > { %p2266_p7 = pnand %p2264_p5, %p2261_p3 }
  0x1b   : > { %2269 = shalt.err (!%p2266_p7)
}
  0x1c   : > { %s2270_s6 = scalar_lea.vmem %s2489_s22, 7168  ;;  %p2278_p2 = scmp.lt.s32.totalorder %s2489_s22, %s2489_s22 }
  0x1d   : > { %p2271_p9 = scmp.ne.s32.totalorder %s2489_s22, %s2270_s6  ;;  %p2279_p12 = scmp.lt.s32.totalorder %s2270_s6, %s2270_s6 }
  0x1f   : > { %p2273_p10 = pnand %p2271_p9, %p2259_p13  ;;  %p2280_p0 = por %p2279_p12, %p2278_p2 }
  0x21   : > { %p2274_p1 = pneg %p2273_p10 }
  0x23   : > { %p2281_p6 = pnand %p2280_p0, %p2274_p1 }
  0x25   : > { %2284 = shalt.err (!%p2281_p6)
}
  0x26   : > { %s2417_s7 = smov 64   ;;  %s2418_s8 = smov 4  }
  0x27   : > { %2143 = dma.hbm_to_vmem [thread:$0]  (!%p2496_p11), %s2757_s1, 7168, %s2489_s22, [#allocation6], %s2417_s7, %s2417_s7, %s2418_s8  }
  0x28   : > { %s2285_s21 = scalar_lea.hbm %s2758_s2, 128 }
  0x29   : > { %p2286_p2 = scmp.ne.s32.totalorder %s2758_s2, %s2285_s21  ;;  %p2292_p10 = scmp.lt.u32.totalorder %s2285_s21, %s2758_s2 }
  0x2b   : > { %p2288_p1 = pnand %p2286_p2, %p2259_p13 }
  0x2d   : > { %p2289_p6 = pneg %p2288_p1 }
  0x2f   : > { %p2294_p3 = pnand %p2292_p10, %p2289_p6 }
  0x31   : > { %2297 = shalt.err (!%p2294_p3)
}
  0x32   : > { %s2298_s22 = scalar_lea.vmem %s2500_s25, 128  ;;  %p2306_p12 = scmp.lt.s32.totalorder %s2500_s25, %s2500_s25 }
  0x33   : > { %p2299_p5 = scmp.ne.s32.totalorder %s2500_s25, %s2298_s22  ;;  %p2307_p0 = scmp.lt.s32.totalorder %s2298_s22, %s2298_s22 }
  0x35   : > { %p2301_p7 = pnand %p2299_p5, %p2259_p13  ;;  %p2308_p2 = por %p2307_p0, %p2306_p12 }
  0x37   : > { %p2302_p9 = pneg %p2301_p7 }
  0x39   : > { %p2309_p1 = pnand %p2308_p2, %p2302_p9 }
  0x3b   : > { %2312 = shalt.err (!%p2309_p1)
}
  0x3c   : > { %2146 = dma.hbm_to_vmem [thread:$0]  (!%p2496_p11), %s2758_s2, 128, %s2500_s25, [#allocation6]  }
  0x3d   : > { %s2555_s4 = sadd.s32 1, %s2413_s15   ;;  %s27_s23 = sadd.s32 1, %s2409_s14 }
  0x3e   : > { %s24_s5 = ssub.s32 %s2413_s15, %s2555_s4  ;;  %p34_p13 = scmp.ne.s32.totalorder %s2409_s14, %s2405_s13 }
  0x3f   : > { %p25_p6 = scmp.eq.s32.totalorder %s24_s5, 0  ;;  %p35_p10 = scmp.eq.s32.totalorder %s2413_s15, 0 }
  0x40   : > { %p2767_p3 = scmp.eq.s32.totalorder %s2466_s16, 1  ;;  %p2157_p7 = scmp.lt.s32.totalorder %s2413_s15, 2 }
  0x41   : > { %s2571_s7 = scalar_select %p25_p6, %s2409_s14, %s27_s23  }
  0x42   : > { %p2565_p5 = por %p2767_p3, %p34_p13  ;;  %p36_p9 = por %p35_p10, %p34_p13 }
  0x43   : > { %s156_s8 = sand.u32 1, %s2409_s14   ;;  %s1774_s25 = sshll.u32 %s2413_s15, 11 }
  0x44   : > { %s2768_s6 = scalar_select %p2565_p5, 1, 0 }
  0x45   : > { %s1698_s9 = sshll.u32 %s156_s8, 7  ;;  %s2578_s17 = scalar_lea.hbm %s2756_s0, %s1774_s25 }
  0x46   : > { %s160_s21 = scalar_lea.vmem [#allocation2], %s1698_s9  ;;  %p2582_p11 = pnand %p2157_p7, %p36_p9 }
  0x47   : > { %s167_s24 = sshll.u32 %s160_s21, 4  ;;  %s2586_s27 = scalar_lea.sflag [#allocation3], %s156_s8  ;;  %s2580_s24 = int_to_ptr.vmem [resolvable:$true] %s167_s24 }
  0x48   : > { %s2313_s28 = scalar_lea.hbm %s2578_s17, 2048  ;;  %p2315_p0 = pneg %p2582_p11 }
  0x49   : > { %p2314_p12 = scmp.ne.s32.totalorder %s2578_s17, %s2313_s28  ;;  %s2318_s30 = scalar_lea.hbm %s2756_s0, 4096 }
  0x4a   : > { %p2319_p13 = scmp.lt.u32.totalorder %s2578_s17, %s2756_s0  ;;  %p2320_p6 = scmp.lt.u32.totalorder %s2318_s30, %s2313_s28 }
  0x4b   : > { %p2316_p2 = pnand %p2315_p0, %p2314_p12  ;;  %p2322_p3 = scmp.lt.u32.totalorder %s2313_s28, %s2578_s17 }
  0x4c   : > { %p2321_p10 = por %p2320_p6, %p2319_p13 }
  0x4d   : > { %p2317_p1 = pneg %p2316_p2 }
  0x4e   : > { %p2323_p7 = por %p2322_p3, %p2321_p10 }
  0x50   : > { %p2324_p9 = pnand %p2323_p7, %p2317_p1 }
  0x52   : > { %2327 = shalt.err (!%p2324_p9)
}
  0x53   : > { %s2328_s8 = scalar_lea.vmem %s2580_s24, 2048  ;;  %s2419_s9 = smov [#allocation2]  }
  0x54   : > { %p2329_p12 = scmp.ne.s32.totalorder %s2580_s24, %s2328_s8  ;;  %s2333_s25 = sshll.u32 %s2419_s9, 4  ;;  %s2334_s25 = int_to_ptr.vmem [resolvable:$false] %s2333_s25 }
  0x55   : > { %s2335_s10 = scalar_lea.vmem %s2334_s25, 4096  ;;  %p2336_p4 = scmp.lt.s32.totalorder %s2580_s24, %s2334_s25 }
  0x56   : > { %p2331_p2 = pnand %p2329_p12, %p2315_p0  ;;  %p2337_p13 = scmp.lt.s32.totalorder %s2335_s10, %s2328_s8 }
  0x58   : > { %p2332_p5 = pneg %p2331_p2  ;;  %p2338_p6 = por %p2337_p13, %p2336_p4 }
  0x5a   : > { %p2339_p10 = pnand %p2338_p6, %p2332_p5 }
  0x5c   : > { %2342 = shalt.err (!%p2339_p10)
}
  0x5d   : > { %s2420_s11 = smov 128   ;;  %s2421_s21 = smov 8  }
  0x5e   : > { %2150 = dma.hbm_to_vmem [thread:$0]  (!%p2582_p11), %s2578_s17, 2048, %s2580_s24, %s2586_s27, %s2420_s11, %s2420_s11, %s2421_s21  }
  0x5f   : > { %179 = sbr.rel (%p2485_p8) target bundleno = 1729 (0x6c1), region = 32  ;;  %s2617_s28 = sand.u32 (!%p2485_p8), 1, %s2405_s13  }
  0x60   : > { %s1702_s22 = sshll.u32 (!%p2485_p8), %s2617_s28, 7  ;;  %s182_s29 = scalar_lea.sflag (!%p2485_p8), [#allocation3], %s2617_s28 }
  0x61   : > { %s2623_s30 = scalar_lea.vmem (!%p2485_p8), [#allocation2], %s1702_s22  ;;  %p2770_p4 = scmp.ne.s32.totalorder (!%p2485_p8), %s2763_s18, 0 }
  0x66   : > { %2388 = dma.done.wait (%p2770_p4), %s182_s29, 2048  }
  0x67   : > { %2390 = vsyncadd (%p2770_p4), %s182_s29, 4294965248  ;;  %p2771_p5 = scmp.eq.s32.totalorder %s2466_s16, 0 }
  0x69   : > { %2392 = dma.done.wait (%p2771_p5), [#allocation6], 7296   ;;  %p2772_p8 = pmov %p2771_p5 }
  0x6a   : > { %v2201_v0 = vld [vmem:[#allocation5] sm:$0xff]   ;;  %v2202_v1 = vld [vmem:[#allocation5 + $0x8] sm:$0xff]   ;;  %v2203_v2 = vld [vmem:[#allocation5 + $0x10] sm:$0xff]   ;;  %s2687_s18 = scalar_lea.vmem [#allocation8], %s1702_s22  ;;  %s1775_s20 = sshll.u32 %s2466_s16, 11 }
  0x6b   : > { %2394 = vsyncadd (%p2772_p8), [#allocation6], 4294960000  ;;  %1888 = vmatprep.subr.bf16.mxu0 %v2201_v0  ;;  %v2204_v3 = vld [vmem:[#allocation5 + $0x18] sm:$0xff]   ;;  %v219_v4 = vld [vmem:[%s2623_s30] sm:$0xff]  ;;  %s1601_s17 = sshll.u32 %s2687_s18, 4  ;;  %s2707_s27 = scalar_lea.hbm %s2759_s3, %s1775_s20  ;;  %s2709_s17 = int_to_ptr.vmem [resolvable:$true] %s1601_s17 }
  0x6c   : > { %1889 = vmatpush3.bf16.msra.mxu0 %v2201_v0  ;;  %v220_v5 = vld [vmem:[%s2623_s30 + $0x8] sm:$0xff]  ;;  %v2205_v7 = vld [vmem:[#allocation5 + $0x20] sm:$0xff]   ;;  %v2211_v11 = vld [vmem:[#allocation5 + $0x50] sm:$0xff]   ;;  %s1588_s16 = scalar_lea.sflag [#allocation4], %s2617_s28  ;;  %s2343_s23 = scalar_lea.vmem %s2709_s17, 2048 }
  0x6d   : > { %1890 = vmatprep.subr.bf16.mxu0 %v2202_v1  ;;  %v235_v6 = vpack.c.bf16 %v220_v5, %v219_v4  ;;  %v2209_v8 = vld [vmem:[#allocation5 + $0x40] sm:$0xff]   ;;  %v2210_v9 = vld [vmem:[#allocation5 + $0x48] sm:$0xff]   ;;  %v2207_v12 = vld [vmem:[#allocation5 + $0x30] sm:$0xff]   ;;  %p2344_p11 = scmp.ne.s32.totalorder %s2709_s17, %s2343_s23  ;;  %p2773_p0 = scmp.ne.s32.totalorder %s2768_s6, 0 }
  0x6e   : > { %v2206_v10 = vld [vmem:[#allocation5 + $0x28] sm:$0xff]   ;;  %1920 = vmatprep.subr.bf16.mxu1 %v2209_v8  ;;  %v2212_v13 = vld [vmem:[#allocation5 + $0x58] sm:$0xff]   ;;  %v2213_v15 = vld [vmem:[#allocation5 + $0x60] sm:$0xff]   ;;  %s2422_s5 = smov [#allocation8]  }
  0x6f   : > { %1904 = vmatprep.mubr.bf16.mxu0 %v235_v6  ;;  %1921 = vmatpush3.bf16.msra.mxu1 %v2209_v8  ;;  %v2208_v14 = vld [vmem:[#allocation5 + $0x38] sm:$0xff]   ;;  %v221_v16 = vld [vmem:[%s2623_s30 + $0x10] sm:$0xff]  ;;  %v223_v18 = vld [vmem:[%s2623_s30 + $0x20] sm:$0xff]  ;;  %p2345_p1 = pnand %p2344_p11, %p2773_p0  ;;  %s2347_s8 = sshll.u32 %s2422_s5, 4  ;;  %s2348_s8 = int_to_ptr.vmem [resolvable:$false] %s2347_s8 }
  0x70   : > { %1891 = vmatpush3.bf16.msra.mxu0 %v2202_v1  ;;  %1922 = vmatprep.subr.bf16.mxu1 %v2210_v9  ;;  %v222_v17 = vld [vmem:[%s2623_s30 + $0x18] sm:$0xff]  ;;  %v224_v19 = vld [vmem:[%s2623_s30 + $0x28] sm:$0xff]  ;;  %v225_v23 = vld [vmem:[%s2623_s30 + $0x30] sm:$0xff]  ;;  %s2349_s9 = scalar_lea.vmem %s2348_s8, 4096  ;;  %p2350_p7 = scmp.lt.s32.totalorder %s2709_s17, %s2348_s8 }
  0x71   : > { %1892 = vmatprep.subr.bf16.mxu0 %v2203_v2  ;;  %v2214_v20 = vld [vmem:[#allocation5 + $0x68] sm:$0xff]   ;;  %v236_v21 = vpack.c.bf16 %v222_v17, %v221_v16  ;;  %v237_v22 = vpack.c.bf16 %v224_v19, %v223_v18  ;;  %v226_v24 = vld [vmem:[%s2623_s30 + $0x38] sm:$0xff]  ;;  %v227_v25 = vld [vmem:[%s2623_s30 + $0x40] sm:$0xff]  ;;  %p2346_p3 = pneg %p2345_p1  ;;  %p2351_p9 = scmp.lt.s32.totalorder %s2349_s9, %s2343_s23 }
  0x72   : > { %v228_v26 = vld [vmem:[%s2623_s30 + $0x48] sm:$0xff]  ;;  %v238_v27 = vpack.c.bf16 %v226_v24, %v225_v23  ;;  %v229_v29 = vld [vmem:[%s2623_s30 + $0x50] sm:$0xff]  ;;  %v230_v30 = vld [vmem:[%s2623_s30 + $0x58] sm:$0xff] }
  0x73   : > { %1923 = vmatpush3.bf16.msra.mxu1 %v2210_v9  ;;  %v239_v28 = vpack.c.bf16 %v228_v26, %v227_v25  ;;  %v231_v31 = vld [vmem:[%s2623_s30 + $0x60] sm:$0xff]  ;;  %v232_v32 = vld [vmem:[%s2623_s30 + $0x68] sm:$0xff]  ;;  %v240_v33 = vpack.c.bf16 %v230_v30, %v229_v29  ;;  %v233_v35 = vld [vmem:[%s2623_s30 + $0x70] sm:$0xff]  ;;  %p2352_p12 = por %p2351_p9, %p2350_p7 }
  0x74   : > { %1893 = vmatpush3.bf16.msra.mxu0 %v2203_v2  ;;  %1924 = vmatprep.subr.bf16.mxu1 %v2211_v11  ;;  %v241_v34 = vpack.c.bf16 %v232_v32, %v231_v31  ;;  %v234_v36 = vld [vmem:[%s2623_s30 + $0x78] sm:$0xff]  ;;  %v2215_v38 = vld [vmem:[#allocation5 + $0x70] sm:$0xff]   ;;  %v2217_v40 = vld [vmem:[#allocation5 + $0x80] sm:$0xff]  }
  0x75   : > { %1894 = vmatprep.subr.bf16.mxu0 %v2204_v3  ;;  %v242_v37 = vpack.c.bf16 %v234_v36, %v233_v35  ;;  %v2216_v39 = vld [vmem:[#allocation5 + $0x78] sm:$0xff]   ;;  %v2218_v41 = vld [vmem:[#allocation5 + $0x88] sm:$0xff]   ;;  %v2219_v42 = vld [vmem:[#allocation5 + $0x90] sm:$0xff]   ;;  %p2353_p2 = pnand %p2352_p12, %p2346_p3 }
  0x76   : > { %v2220_v43 = vld [vmem:[#allocation5 + $0x98] sm:$0xff]   ;;  %v2221_v44 = vld [vmem:[#allocation5 + $0xa0] sm:$0xff]   ;;  %v2222_v45 = vld [vmem:[#allocation5 + $0xa8] sm:$0xff]  }
  0x77   : > { %1925 = vmatpush3.bf16.msra.mxu1 %v2211_v11  ;;  %v1706_v46 = vld [vmem:[#allocation7] ss:$0 sm:$0xff] }
  0x78   : > { %1895 = vmatpush3.bf16.msra.mxu0 %v2204_v3  ;;  %1926 = vmatprep.subr.bf16.mxu1 %v2212_v13 }
  0x79   : > { %1896 = vmatprep.subr.bf16.mxu0 %v2205_v7 }
  0x7b   : > { %1927 = vmatpush3.bf16.msra.mxu1 %v2212_v13 }
  0x7c   : > { %1897 = vmatpush3.bf16.msra.mxu0 %v2205_v7  ;;  %1928 = vmatprep.subr.bf16.mxu1 %v2213_v15 }
  0x7d   : > { %1898 = vmatprep.subr.bf16.mxu0 %v2206_v10 }
  0x7f   : > { %1929 = vmatpush3.bf16.msra.mxu1 %v2213_v15 }
  0x80   : > { %1899 = vmatpush3.bf16.msra.mxu0 %v2206_v10  ;;  %1930 = vmatprep.subr.bf16.mxu1 %v2214_v20 }
  0x81   : > { %1900 = vmatprep.subr.bf16.mxu0 %v2207_v12 }
  0x83   : > { %1931 = vmatpush3.bf16.msra.mxu1 %v2214_v20 }
  0x84   : > { %1901 = vmatpush3.bf16.msra.mxu0 %v2207_v12  ;;  %1932 = vmatprep.subr.bf16.mxu1 %v2215_v38 }
  0x85   : > { %1902 = vmatprep.subr.bf16.mxu0 %v2208_v14 }
  0x87   : > { %1933 = vmatpush3.bf16.msra.mxu1 %v2215_v38 }
  0x88   : > { %1903 = vmatpush3.bf16.msra.mxu0 %v2208_v14  ;;  %1934 = vmatprep.subr.bf16.mxu1 %v2216_v39 }
  0x89   : > { %1952 = vmatprep.subr.bf16.mxu0 %v2217_v40 }
  0x8b   : > { %1905 = vmatmul.mubr.bf16.vlgmr.msra.gmra.mrb[0].mxu0 %v236_v21  ;;  %1935 = vmatpush3.bf16.msra.mxu1 %v2216_v39  ;;  %v2223_v39 = vld [vmem:[#allocation5 + $0xb0] sm:$0xff]  }
  0x8c   : > { %1908 = vmatprep.mubr.bf16.mxu0 %v237_v22  ;;  %1953 = vmatpush3.bf16.msra.mxu0 %v2217_v40  ;;  %v2224_v40 = vld [vmem:[#allocation5 + $0xb8] sm:$0xff]  }
  0x8d   : > { %1954 = vmatprep.subr.bf16.mxu0 %v2218_v41 }
  0x90   : > { %1955 = vmatpush3.bf16.msra.mxu0 %v2218_v41  ;;  %v2225_v41 = vld [vmem:[#allocation5 + $0xc0] sm:$0xff]  }
  0x91   : > { %1956 = vmatprep.subr.bf16.mxu0 %v2219_v42  ;;  %1984 = vmatprep.subr.bf16.mxu1 %v2225_v41 }
  0x93   : > { %1909 = vmatmul.mubr.bf16.gmra.mrb[4].mxu0 %v238_v27 }
  0x94   : > { %1912 = vmatprep.mubr.bf16.mxu0 %v239_v28  ;;  %1957 = vmatpush3.bf16.msra.mxu0 %v2219_v42  ;;  %v2226_v42 = vld [vmem:[#allocation5 + $0xc8] sm:$0xff]  }
  0x95   : > { %1958 = vmatprep.subr.bf16.mxu0 %v2220_v43 }
  0x98   : > { %1959 = vmatpush3.bf16.msra.mxu0 %v2220_v43  ;;  %v2227_v43 = vld [vmem:[#allocation5 + $0xd0] sm:$0xff]  }
  0x99   : > { %1960 = vmatprep.subr.bf16.mxu0 %v2221_v44 }
  0x9b   : > { %1913 = vmatmul.mubr.bf16.gmra.mrb[8].mxu0 %v240_v33 }
  0x9c   : > { %1916 = vmatprep.mubr.bf16.mxu0 %v241_v34  ;;  %1961 = vmatpush3.bf16.msra.mxu0 %v2221_v44  ;;  %v2228_v44 = vld [vmem:[#allocation5 + $0xd8] sm:$0xff]  }
  0x9d   : > { %1962 = vmatprep.subr.bf16.mxu0 %v2222_v45 }
  0xa0   : > { %1963 = vmatpush3.bf16.msra.mxu0 %v2222_v45  ;;  %v2229_v45 = vld [vmem:[#allocation5 + $0xe0] sm:$0xff]  }
  0xa1   : > { %1964 = vmatprep.subr.bf16.mxu0 %v2223_v39 }
  0xa3   : > { %1917 = vmatmul.mubr.bf16.gmra.mrb[12].mxu0 %v242_v37 }
  0xa4   : > { %1965 = vmatpush3.bf16.msra.mxu0 %v2223_v39 }
  0xa5   : > { %1966 = vmatprep.subr.bf16.mxu0 %v2224_v40 }
  0xa8   : > { %1967 = vmatpush3.bf16.msra.mxu0 %v2224_v40  ;;  %v2231_v40 = vld [vmem:[#allocation5 + $0xf0] sm:$0xff]  }
 0x15e   : > { %v1906_v47 = vpop.f32.mrb[0].mxu0 }
 0x15f   : > { %v355_v48 = vadd.f32 %v1906_v47, %v1706_v46  ;;  %v346_v49 = vpop.f32.mrb[1].mxu0  ;;  %v1715_v47 = vld [vmem:[#allocation7 + $0x1] ss:$0 sm:$0xff] }
 0x160   : > { %v347_v50 = vadd.f32 %v1706_v46, %v346_v49  ;;  %v1907_v51 = vpop.f32.mrb[2].mxu0 }
 0x161   : > { %v358_v52 = vadd.f32 %v1907_v51, %v1706_v46  ;;  %v349_v53 = vpop.f32.mrb[3].mxu0  ;;  %v411_v55 = vmax.f32 %v355_v48, 0.0 }
 0x162   : > { %v350_v54 = vadd.f32 %v1706_v46, %v349_v53  ;;  %v409_v57 = vmax.f32 %v347_v50, 0.0 }
 0x163   : > { %v412_v56 = vmax.f32 %v358_v52, 0.0 }
 0x164   : > { %v410_v58 = vmax.f32 %v350_v54, 0.0 }
 0x165   : > { %v426_v59 = vpack.c.bf16 %v412_v56, %v411_v55 }
 0x166   : > { %v1910_v60 = vpop.f32.mrb[4].mxu0  ;;  %v425_v61 = vpack.c.bf16 %v410_v58, %v409_v57 }
 0x167   : > { %v371_v62 = vadd.f32 %v1910_v60, %v1706_v46  ;;  %v362_v63 = vpop.f32.mrb[5].mxu0 }
 0x168   : > { %v363_v0 = vadd.f32 %v1706_v46, %v362_v63  ;;  %v1911_v1 = vpop.f32.mrb[6].mxu0  ;;  %1936 = vmatprep.mubr.bf16.mxu1 %v425_v61 }
 0x169   : > { %v374_v2 = vadd.f32 %v1911_v1, %v1706_v46  ;;  %v365_v3 = vpop.f32.mrb[7].mxu0  ;;  %1937 = vmatmul.mubr.bf16.vlgmr.msra.gmra.mrb[0].mxu1 %v426_v59  ;;  %v415_v5 = vmax.f32 %v371_v62, 0.0 }
 0x16a   : > { %v366_v4 = vadd.f32 %v1706_v46, %v365_v3  ;;  %v413_v7 = vmax.f32 %v363_v0, 0.0  ;;  %1985 = vmatpush3.bf16.msra.mxu1 %v2225_v41  ;;  %v2232_v41 = vld [vmem:[#allocation5 + $0xf8] sm:$0xff]  }
 0x16b   : > { %v416_v6 = vmax.f32 %v374_v2, 0.0  ;;  %1986 = vmatprep.subr.bf16.mxu1 %v2226_v42 }
 0x16c   : > { %v414_v8 = vmax.f32 %v366_v4, 0.0 }
 0x16d   : > { %v428_v9 = vpack.c.bf16 %v416_v6, %v415_v5 }
 0x16e   : > { %v427_v10 = vpack.c.bf16 %v414_v8, %v413_v7  ;;  %v1914_v11 = vpop.f32.mrb[8].mxu0  ;;  %1987 = vmatpush3.bf16.msra.mxu1 %v2226_v42  ;;  %v2233_v42 = vld [vmem:[#allocation5 + $0x100] sm:$0xff]  }
 0x16f   : > { %v387_v12 = vadd.f32 %v1914_v11, %v1706_v46  ;;  %v378_v13 = vpop.f32.mrb[9].mxu0  ;;  %1988 = vmatprep.subr.bf16.mxu1 %v2227_v43  ;;  %2016 = vmatprep.subr.bf16.mxu0 %v2233_v42 }
 0x170   : > { %v379_v14 = vadd.f32 %v1706_v46, %v378_v13  ;;  %v1915_v15 = vpop.f32.mrb[10].mxu0  ;;  %1940 = vmatprep.mubr.bf16.mxu1 %v427_v10 }
 0x171   : > { %v390_v16 = vadd.f32 %v1915_v15, %v1706_v46  ;;  %v381_v17 = vpop.f32.mrb[11].mxu0  ;;  %1941 = vmatmul.mubr.bf16.gmra.mrb[4].mxu1 %v428_v9  ;;  %v419_v19 = vmax.f32 %v387_v12, 0.0 }
 0x172   : > { %v382_v18 = vadd.f32 %v1706_v46, %v381_v17  ;;  %v417_v21 = vmax.f32 %v379_v14, 0.0  ;;  %1989 = vmatpush3.bf16.msra.mxu1 %v2227_v43  ;;  %v2234_v43 = vld [vmem:[#allocation5 + $0x108] sm:$0xff]  }
 0x173   : > { %v420_v20 = vmax.f32 %v390_v16, 0.0  ;;  %1990 = vmatprep.subr.bf16.mxu1 %v2228_v44 }
 0x174   : > { %v418_v22 = vmax.f32 %v382_v18, 0.0 }
 0x175   : > { %v430_v23 = vpack.c.bf16 %v420_v20, %v419_v19 }
 0x176   : > { %v429_v24 = vpack.c.bf16 %v418_v22, %v417_v21  ;;  %v1918_v25 = vpop.f32.mrb[12].mxu0  ;;  %1991 = vmatpush3.bf16.msra.mxu1 %v2228_v44  ;;  %v2235_v44 = vld [vmem:[#allocation5 + $0x110] sm:$0xff]  }
 0x177   : > { %v403_v26 = vadd.f32 %v1918_v25, %v1706_v46  ;;  %v394_v27 = vpop.f32.mrb[13].mxu0  ;;  %1992 = vmatprep.subr.bf16.mxu1 %v2229_v45 }
 0x178   : > { %v395_v28 = vadd.f32 %v1706_v46, %v394_v27  ;;  %v1919_v29 = vpop.f32.mrb[14].mxu0  ;;  %1944 = vmatprep.mubr.bf16.mxu1 %v429_v24 }
 0x179   : > { %v406_v30 = vadd.f32 %v1919_v29, %v1706_v46  ;;  %v397_v31 = vpop.f32.mrb[15].mxu0  ;;  %1945 = vmatmul.mubr.bf16.gmra.mrb[8].mxu1 %v430_v23  ;;  %v423_v33 = vmax.f32 %v403_v26, 0.0 }
 0x17a   : > { %v398_v32 = vadd.f32 %v1706_v46, %v397_v31  ;;  %v421_v35 = vmax.f32 %v395_v28, 0.0  ;;  %v2230_v46 = vld [vmem:[#allocation5 + $0xe8] sm:$0xff]   ;;  %1993 = vmatpush3.bf16.msra.mxu1 %v2229_v45  ;;  %v2236_v45 = vld [vmem:[#allocation5 + $0x118] sm:$0xff]  }
 0x17b   : > { %v424_v34 = vmax.f32 %v406_v30, 0.0  ;;  %1994 = vmatprep.subr.bf16.mxu1 %v2230_v46 }
 0x17c   : > { %v422_v36 = vmax.f32 %v398_v32, 0.0 }
 0x17d   : > { %v432_v37 = vpack.c.bf16 %v424_v34, %v423_v33 }
 0x17e   : > { %v431_v38 = vpack.c.bf16 %v422_v36, %v421_v35  ;;  %1995 = vmatpush3.bf16.msra.mxu1 %v2230_v46  ;;  %v2237_v46 = vld [vmem:[#allocation5 + $0x120] sm:$0xff]  }
 0x17f   : > { %1996 = vmatprep.subr.bf16.mxu1 %v2231_v40 }
 0x180   : > { %1948 = vmatprep.mubr.bf16.mxu1 %v431_v38 }
 0x181   : > { %1949 = vmatmul.mubr.bf16.gmra.mrb[12].mxu1 %v432_v37 }
 0x182   : > { %1997 = vmatpush3.bf16.msra.mxu1 %v2231_v40 }
 0x183   : > { %1998 = vmatprep.subr.bf16.mxu1 %v2232_v41 }
 0x186   : > { %1999 = vmatpush3.bf16.msra.mxu1 %v2232_v41  ;;  %v2239_v41 = vld [vmem:[#allocation5 + $0x130] sm:$0xff]  }
 0x23c   : > { %v1938_v48 = vpop.f32.mrb[0].mxu1 }
 0x23d   : > { %v546_v49 = vadd.f32 %v1938_v48, %v1715_v47  ;;  %v537_v50 = vpop.f32.mrb[1].mxu1  ;;  %v1724_v48 = vld [vmem:[#allocation7 + $0x2] ss:$0 sm:$0xff] }
 0x23e   : > { %v538_v51 = vadd.f32 %v1715_v47, %v537_v50  ;;  %v1939_v52 = vpop.f32.mrb[2].mxu1 }
 0x23f   : > { %v549_v53 = vadd.f32 %v1939_v52, %v1715_v47  ;;  %v540_v54 = vpop.f32.mrb[3].mxu1  ;;  %v602_v56 = vmax.f32 %v546_v49, 0.0 }
 0x240   : > { %v541_v55 = vadd.f32 %v1715_v47, %v540_v54  ;;  %v600_v58 = vmax.f32 %v538_v51, 0.0 }
 0x241   : > { %v603_v57 = vmax.f32 %v549_v53, 0.0 }
 0x242   : > { %v601_v59 = vmax.f32 %v541_v55, 0.0 }
 0x243   : > { %v617_v60 = vpack.c.bf16 %v603_v57, %v602_v56 }
 0x244   : > { %v616_v61 = vpack.c.bf16 %v601_v59, %v600_v58  ;;  %v1942_v62 = vpop.f32.mrb[4].mxu1 }
 0x245   : > { %v562_v63 = vadd.f32 %v1942_v62, %v1715_v47  ;;  %v553_v0 = vpop.f32.mrb[5].mxu1 }
 0x246   : > { %v554_v1 = vadd.f32 %v1715_v47, %v553_v0  ;;  %v1943_v2 = vpop.f32.mrb[6].mxu1  ;;  %1968 = vmatprep.mubr.bf16.mxu0 %v616_v61 }
 0x247   : > { %v565_v3 = vadd.f32 %v1943_v2, %v1715_v47  ;;  %v556_v4 = vpop.f32.mrb[7].mxu1  ;;  %1969 = vmatmul.mubr.bf16.vlgmr.msra.gmra.mrb[16].mxu0 %v617_v60  ;;  %v606_v6 = vmax.f32 %v562_v63, 0.0 }
 0x248   : > { %v557_v5 = vadd.f32 %v1715_v47, %v556_v4  ;;  %v604_v8 = vmax.f32 %v554_v1, 0.0  ;;  %2017 = vmatpush3.bf16.msra.mxu0 %v2233_v42  ;;  %v2240_v42 = vld [vmem:[#allocation5 + $0x138] sm:$0xff]  }
 0x249   : > { %v607_v7 = vmax.f32 %v565_v3, 0.0  ;;  %2018 = vmatprep.subr.bf16.mxu0 %v2234_v43 }
 0x24a   : > { %v605_v9 = vmax.f32 %v557_v5, 0.0 }
 0x24b   : > { %v619_v10 = vpack.c.bf16 %v607_v7, %v606_v6 }
 0x24c   : > { %v618_v11 = vpack.c.bf16 %v605_v9, %v604_v8  ;;  %v1946_v12 = vpop.f32.mrb[8].mxu1  ;;  %2019 = vmatpush3.bf16.msra.mxu0 %v2234_v43  ;;  %v2241_v43 = vld [vmem:[#allocation5 + $0x140] sm:$0xff]  }
 0x24d   : > { %v578_v13 = vadd.f32 %v1946_v12, %v1715_v47  ;;  %v569_v14 = vpop.f32.mrb[9].mxu1  ;;  %2020 = vmatprep.subr.bf16.mxu0 %v2235_v44  ;;  %2048 = vmatprep.subr.bf16.mxu1 %v2241_v43 }
 0x24e   : > { %v570_v15 = vadd.f32 %v1715_v47, %v569_v14  ;;  %v1947_v16 = vpop.f32.mrb[10].mxu1  ;;  %1972 = vmatprep.mubr.bf16.mxu0 %v618_v11 }
 0x24f   : > { %v581_v17 = vadd.f32 %v1947_v16, %v1715_v47  ;;  %v572_v18 = vpop.f32.mrb[11].mxu1  ;;  %1973 = vmatmul.mubr.bf16.gmra.mrb[20].mxu0 %v619_v10  ;;  %v610_v20 = vmax.f32 %v578_v13, 0.0 }
 0x250   : > { %v573_v19 = vadd.f32 %v1715_v47, %v572_v18  ;;  %v608_v22 = vmax.f32 %v570_v15, 0.0  ;;  %2021 = vmatpush3.bf16.msra.mxu0 %v2235_v44  ;;  %v2242_v44 = vld [vmem:[#allocation5 + $0x148] sm:$0xff]  }
 0x251   : > { %v611_v21 = vmax.f32 %v581_v17, 0.0  ;;  %2022 = vmatprep.subr.bf16.mxu0 %v2236_v45 }
 0x252   : > { %v609_v23 = vmax.f32 %v573_v19, 0.0 }
 0x253   : > { %v621_v24 = vpack.c.bf16 %v611_v21, %v610_v20 }
 0x254   : > { %v620_v25 = vpack.c.bf16 %v609_v23, %v608_v22  ;;  %v1950_v26 = vpop.f32.mrb[12].mxu1  ;;  %2023 = vmatpush3.bf16.msra.mxu0 %v2236_v45  ;;  %v2243_v45 = vld [vmem:[#allocation5 + $0x150] sm:$0xff]  }
 0x255   : > { %v594_v27 = vadd.f32 %v1950_v26, %v1715_v47  ;;  %v585_v28 = vpop.f32.mrb[13].mxu1  ;;  %2024 = vmatprep.subr.bf16.mxu0 %v2237_v46 }
 0x256   : > { %v586_v29 = vadd.f32 %v1715_v47, %v585_v28  ;;  %v1951_v30 = vpop.f32.mrb[14].mxu1  ;;  %1976 = vmatprep.mubr.bf16.mxu0 %v620_v25 }
 0x257   : > { %v597_v31 = vadd.f32 %v1951_v30, %v1715_v47  ;;  %v588_v32 = vpop.f32.mrb[15].mxu1  ;;  %1977 = vmatmul.mubr.bf16.gmra.mrb[24].mxu0 %v621_v24  ;;  %v614_v34 = vmax.f32 %v594_v27, 0.0 }
 0x258   : > { %v589_v33 = vadd.f32 %v1715_v47, %v588_v32  ;;  %v612_v36 = vmax.f32 %v586_v29, 0.0  ;;  %v2238_v47 = vld [vmem:[#allocation5 + $0x128] sm:$0xff]   ;;  %2025 = vmatpush3.bf16.msra.mxu0 %v2237_v46  ;;  %v2244_v46 = vld [vmem:[#allocation5 + $0x158] sm:$0xff]  }
 0x259   : > { %v615_v35 = vmax.f32 %v597_v31, 0.0  ;;  %2026 = vmatprep.subr.bf16.mxu0 %v2238_v47 }
 0x25a   : > { %v613_v37 = vmax.f32 %v589_v33, 0.0 }
 0x25b   : > { %v623_v38 = vpack.c.bf16 %v615_v35, %v614_v34 }
 0x25c   : > { %v622_v39 = vpack.c.bf16 %v613_v37, %v612_v36  ;;  %2027 = vmatpush3.bf16.msra.mxu0 %v2238_v47  ;;  %v2245_v47 = vld [vmem:[#allocation5 + $0x160] sm:$0xff]  }
 0x25d   : > { %2028 = vmatprep.subr.bf16.mxu0 %v2239_v41 }
 0x25e   : > { %1980 = vmatprep.mubr.bf16.mxu0 %v622_v39 }
 0x25f   : > { %1981 = vmatmul.mubr.bf16.gmra.mrb[28].mxu0 %v623_v38 }
 0x260   : > { %2029 = vmatpush3.bf16.msra.mxu0 %v2239_v41 }
 0x261   : > { %2030 = vmatprep.subr.bf16.mxu0 %v2240_v42 }
 0x264   : > { %2031 = vmatpush3.bf16.msra.mxu0 %v2240_v42  ;;  %v2247_v42 = vld [vmem:[#allocation5 + $0x170] sm:$0xff]  }
 0x31a   : > { %v1970_v49 = vpop.f32.mrb[16].mxu0 }
 0x31b   : > { %v737_v50 = vadd.f32 %v1970_v49, %v1724_v48  ;;  %v728_v51 = vpop.f32.mrb[17].mxu0  ;;  %v1733_v49 = vld [vmem:[#allocation7 + $0x3] ss:$0 sm:$0xff] }
 0x31c   : > { %v729_v52 = vadd.f32 %v1724_v48, %v728_v51  ;;  %v1971_v53 = vpop.f32.mrb[18].mxu0 }
 0x31d   : > { %v740_v54 = vadd.f32 %v1971_v53, %v1724_v48  ;;  %v731_v55 = vpop.f32.mrb[19].mxu0  ;;  %v793_v57 = vmax.f32 %v737_v50, 0.0 }
 0x31e   : > { %v732_v56 = vadd.f32 %v1724_v48, %v731_v55  ;;  %v791_v59 = vmax.f32 %v729_v52, 0.0 }
 0x31f   : > { %v794_v58 = vmax.f32 %v740_v54, 0.0 }
 0x320   : > { %v792_v60 = vmax.f32 %v732_v56, 0.0 }
 0x321   : > { %v808_v61 = vpack.c.bf16 %v794_v58, %v793_v57 }
 0x322   : > { %v807_v62 = vpack.c.bf16 %v792_v60, %v791_v59  ;;  %v1974_v63 = vpop.f32.mrb[20].mxu0 }
 0x323   : > { %v753_v0 = vadd.f32 %v1974_v63, %v1724_v48  ;;  %v744_v1 = vpop.f32.mrb[21].mxu0 }
 0x324   : > { %v745_v2 = vadd.f32 %v1724_v48, %v744_v1  ;;  %v1975_v3 = vpop.f32.mrb[22].mxu0  ;;  %2000 = vmatprep.mubr.bf16.mxu1 %v807_v62 }
 0x325   : > { %v756_v4 = vadd.f32 %v1975_v3, %v1724_v48  ;;  %v747_v5 = vpop.f32.mrb[23].mxu0  ;;  %2001 = vmatmul.mubr.bf16.vlgmr.msra.gmra.mrb[16].mxu1 %v808_v61  ;;  %v797_v7 = vmax.f32 %v753_v0, 0.0 }
 0x326   : > { %v748_v6 = vadd.f32 %v1724_v48, %v747_v5  ;;  %v795_v9 = vmax.f32 %v745_v2, 0.0  ;;  %2049 = vmatpush3.bf16.msra.mxu1 %v2241_v43  ;;  %v2248_v43 = vld [vmem:[#allocation5 + $0x178] sm:$0xff]  }
 0x327   : > { %v798_v8 = vmax.f32 %v756_v4, 0.0  ;;  %2050 = vmatprep.subr.bf16.mxu1 %v2242_v44 }
 0x328   : > { %v796_v10 = vmax.f32 %v748_v6, 0.0 }
 0x329   : > { %v810_v11 = vpack.c.bf16 %v798_v8, %v797_v7 }
 0x32a   : > { %v809_v12 = vpack.c.bf16 %v796_v10, %v795_v9  ;;  %v1978_v13 = vpop.f32.mrb[24].mxu0  ;;  %2051 = vmatpush3.bf16.msra.mxu1 %v2242_v44  ;;  %v2249_v44 = vld [vmem:[#allocation5 + $0x180] sm:$0xff]  }
 0x32b   : > { %v769_v14 = vadd.f32 %v1978_v13, %v1724_v48  ;;  %v760_v15 = vpop.f32.mrb[25].mxu0  ;;  %2052 = vmatprep.subr.bf16.mxu1 %v2243_v45  ;;  %2080 = vmatprep.subr.bf16.mxu0 %v2249_v44 }
 0x32c   : > { %v761_v16 = vadd.f32 %v1724_v48, %v760_v15  ;;  %v1979_v17 = vpop.f32.mrb[26].mxu0  ;;  %2004 = vmatprep.mubr.bf16.mxu1 %v809_v12 }
 0x32d   : > { %v772_v18 = vadd.f32 %v1979_v17, %v1724_v48  ;;  %v763_v19 = vpop.f32.mrb[27].mxu0  ;;  %2005 = vmatmul.mubr.bf16.gmra.mrb[20].mxu1 %v810_v11  ;;  %v801_v21 = vmax.f32 %v769_v14, 0.0 }
 0x32e   : > { %v764_v20 = vadd.f32 %v1724_v48, %v763_v19  ;;  %v799_v23 = vmax.f32 %v761_v16, 0.0  ;;  %2053 = vmatpush3.bf16.msra.mxu1 %v2243_v45  ;;  %v2250_v45 = vld [vmem:[#allocation5 + $0x188] sm:$0xff]  }
 0x32f   : > { %v802_v22 = vmax.f32 %v772_v18, 0.0  ;;  %2054 = vmatprep.subr.bf16.mxu1 %v2244_v46 }
 0x330   : > { %v800_v24 = vmax.f32 %v764_v20, 0.0 }
 0x331   : > { %v812_v25 = vpack.c.bf16 %v802_v22, %v801_v21 }
 0x332   : > { %v811_v26 = vpack.c.bf16 %v800_v24, %v799_v23  ;;  %v1982_v27 = vpop.f32.mrb[28].mxu0  ;;  %2055 = vmatpush3.bf16.msra.mxu1 %v2244_v46  ;;  %v2251_v46 = vld [vmem:[#allocation5 + $0x190] sm:$0xff]  }
 0x333   : > { %v785_v28 = vadd.f32 %v1982_v27, %v1724_v48  ;;  %v776_v29 = vpop.f32.mrb[29].mxu0  ;;  %2056 = vmatprep.subr.bf16.mxu1 %v2245_v47 }
 0x334   : > { %v777_v30 = vadd.f32 %v1724_v48, %v776_v29  ;;  %v1983_v31 = vpop.f32.mrb[30].mxu0  ;;  %2008 = vmatprep.mubr.bf16.mxu1 %v811_v26 }
 0x335   : > { %v788_v32 = vadd.f32 %v1983_v31, %v1724_v48  ;;  %v779_v33 = vpop.f32.mrb[31].mxu0  ;;  %2009 = vmatmul.mubr.bf16.gmra.mrb[24].mxu1 %v812_v25  ;;  %v805_v35 = vmax.f32 %v785_v28, 0.0 }
 0x336   : > { %v780_v34 = vadd.f32 %v1724_v48, %v779_v33  ;;  %v803_v37 = vmax.f32 %v777_v30, 0.0  ;;  %v2246_v48 = vld [vmem:[#allocation5 + $0x168] sm:$0xff]   ;;  %2057 = vmatpush3.bf16.msra.mxu1 %v2245_v47  ;;  %v2649_v47 = vld [vmem:[#allocation5 + $0x198] sm:$0xff]  }
 0x337   : > { %v806_v36 = vmax.f32 %v788_v32, 0.0  ;;  %2058 = vmatprep.subr.bf16.mxu1 %v2246_v48 }
 0x338   : > { %v804_v38 = vmax.f32 %v780_v34, 0.0 }
 0x339   : > { %v814_v39 = vpack.c.bf16 %v806_v36, %v805_v35 }
 0x33a   : > { %v813_v40 = vpack.c.bf16 %v804_v38, %v803_v37  ;;  %2059 = vmatpush3.bf16.msra.mxu1 %v2246_v48  ;;  %v2652_v48 = vld [vmem:[#allocation5 + $0x1a0] sm:$0xff]  }
 0x33b   : > { %2060 = vmatprep.subr.bf16.mxu1 %v2247_v42 }
 0x33c   : > { %2012 = vmatprep.mubr.bf16.mxu1 %v813_v40 }
 0x33d   : > { %2013 = vmatmul.mubr.bf16.gmra.mrb[28].mxu1 %v814_v39 }
 0x33e   : > { %2061 = vmatpush3.bf16.msra.mxu1 %v2247_v42 }
 0x33f   : > { %2062 = vmatprep.subr.bf16.mxu1 %v2248_v43 }
 0x342   : > { %2063 = vmatpush3.bf16.msra.mxu1 %v2248_v43  ;;  %v2255_v43 = vld [vmem:[#allocation5 + $0x1b0] sm:$0xff]  }
 0x343   : > { %2112 = vmatprep.subr.bf16.mxu1 %v2249_v44 }
 0x3f8   : > { %v2002_v50 = vpop.f32.mrb[16].mxu1 }
 0x3f9   : > { %v928_v51 = vadd.f32 %v2002_v50, %v1733_v49  ;;  %v919_v52 = vpop.f32.mrb[17].mxu1  ;;  %v2661_v50 = vld [vmem:[#allocation7 + $0x4] ss:$0 sm:$0xff] }
 0x3fa   : > { %v920_v53 = vadd.f32 %v1733_v49, %v919_v52  ;;  %v2003_v54 = vpop.f32.mrb[18].mxu1 }
 0x3fb   : > { %v931_v55 = vadd.f32 %v2003_v54, %v1733_v49  ;;  %v922_v56 = vpop.f32.mrb[19].mxu1  ;;  %v984_v58 = vmax.f32 %v928_v51, 0.0 }
 0x3fc   : > { %v923_v57 = vadd.f32 %v1733_v49, %v922_v56  ;;  %v982_v60 = vmax.f32 %v920_v53, 0.0 }
 0x3fd   : > { %v985_v59 = vmax.f32 %v931_v55, 0.0 }
 0x3fe   : > { %v983_v61 = vmax.f32 %v923_v57, 0.0 }
 0x3ff   : > { %v999_v62 = vpack.c.bf16 %v985_v59, %v984_v58 }
 0x400   : > { %v998_v63 = vpack.c.bf16 %v983_v61, %v982_v60  ;;  %v2006_v0 = vpop.f32.mrb[20].mxu1 }
 0x401   : > { %v944_v1 = vadd.f32 %v2006_v0, %v1733_v49  ;;  %v935_v2 = vpop.f32.mrb[21].mxu1 }
 0x402   : > { %v936_v3 = vadd.f32 %v1733_v49, %v935_v2  ;;  %v2007_v4 = vpop.f32.mrb[22].mxu1  ;;  %2032 = vmatprep.mubr.bf16.mxu0 %v998_v63 }
 0x403   : > { %v947_v5 = vadd.f32 %v2007_v4, %v1733_v49  ;;  %v938_v6 = vpop.f32.mrb[23].mxu1  ;;  %2033 = vmatmul.mubr.bf16.vlgmr.msra.gmra.mrb[32].mxu0 %v999_v62  ;;  %v988_v8 = vmax.f32 %v944_v1, 0.0 }
 0x404   : > { %v939_v7 = vadd.f32 %v1733_v49, %v938_v6  ;;  %v986_v10 = vmax.f32 %v936_v3, 0.0  ;;  %2081 = vmatpush3.bf16.msra.mxu0 %v2249_v44 }
 0x405   : > { %v989_v9 = vmax.f32 %v947_v5, 0.0  ;;  %2082 = vmatprep.subr.bf16.mxu0 %v2250_v45 }
 0x406   : > { %v987_v11 = vmax.f32 %v939_v7, 0.0 }
 0x407   : > { %v1001_v12 = vpack.c.bf16 %v989_v9, %v988_v8 }
 0x408   : > { %v1000_v13 = vpack.c.bf16 %v987_v11, %v986_v10  ;;  %v2010_v14 = vpop.f32.mrb[24].mxu1  ;;  %2083 = vmatpush3.bf16.msra.mxu0 %v2250_v45 }
 0x409   : > { %v960_v15 = vadd.f32 %v2010_v14, %v1733_v49  ;;  %v951_v16 = vpop.f32.mrb[25].mxu1  ;;  %2084 = vmatprep.subr.bf16.mxu0 %v2251_v46 }
 0x40a   : > { %v952_v17 = vadd.f32 %v1733_v49, %v951_v16  ;;  %v2011_v18 = vpop.f32.mrb[26].mxu1  ;;  %2036 = vmatprep.mubr.bf16.mxu0 %v1000_v13 }
 0x40b   : > { %v963_v19 = vadd.f32 %v2011_v18, %v1733_v49  ;;  %v954_v20 = vpop.f32.mrb[27].mxu1  ;;  %2037 = vmatmul.mubr.bf16.gmra.mrb[36].mxu0 %v1001_v12  ;;  %v992_v22 = vmax.f32 %v960_v15, 0.0 }
 0x40c   : > { %v955_v21 = vadd.f32 %v1733_v49, %v954_v20  ;;  %v990_v24 = vmax.f32 %v952_v17, 0.0  ;;  %2085 = vmatpush3.bf16.msra.mxu0 %v2251_v46 }
 0x40d   : > { %v993_v23 = vmax.f32 %v963_v19, 0.0  ;;  %2086 = vmatprep.subr.bf16.mxu0 %v2649_v47 }
 0x40e   : > { %v991_v25 = vmax.f32 %v955_v21, 0.0 }
 0x40f   : > { %v1003_v26 = vpack.c.bf16 %v993_v23, %v992_v22 }
 0x410   : > { %v1002_v27 = vpack.c.bf16 %v991_v25, %v990_v24  ;;  %v2014_v28 = vpop.f32.mrb[28].mxu1  ;;  %2087 = vmatpush3.bf16.msra.mxu0 %v2649_v47 }
 0x411   : > { %v976_v29 = vadd.f32 %v2014_v28, %v1733_v49  ;;  %v967_v30 = vpop.f32.mrb[29].mxu1  ;;  %2088 = vmatprep.subr.bf16.mxu0 %v2652_v48 }
 0x412   : > { %v968_v31 = vadd.f32 %v1733_v49, %v967_v30  ;;  %v2015_v32 = vpop.f32.mrb[30].mxu1  ;;  %2040 = vmatprep.mubr.bf16.mxu0 %v1002_v27 }
 0x413   : > { %v979_v33 = vadd.f32 %v2015_v32, %v1733_v49  ;;  %v970_v34 = vpop.f32.mrb[31].mxu1  ;;  %2041 = vmatmul.mubr.bf16.gmra.mrb[40].mxu0 %v1003_v26  ;;  %v996_v36 = vmax.f32 %v976_v29, 0.0 }
 0x414   : > { %v971_v35 = vadd.f32 %v1733_v49, %v970_v34  ;;  %v994_v38 = vmax.f32 %v968_v31, 0.0  ;;  %v2656_v49 = vld [vmem:[#allocation5 + $0x1a8] sm:$0xff]   ;;  %2089 = vmatpush3.bf16.msra.mxu0 %v2652_v48 }
 0x415   : > { %v997_v37 = vmax.f32 %v979_v33, 0.0  ;;  %2090 = vmatprep.subr.bf16.mxu0 %v2656_v49 }
 0x416   : > { %v995_v39 = vmax.f32 %v971_v35, 0.0 }
 0x417   : > { %v1005_v40 = vpack.c.bf16 %v997_v37, %v996_v36 }
 0x418   : > { %v1004_v41 = vpack.c.bf16 %v995_v39, %v994_v38  ;;  %2091 = vmatpush3.bf16.msra.mxu0 %v2656_v49 }
 0x419   : > { %2092 = vmatprep.subr.bf16.mxu0 %v2255_v43 }
 0x41a   : > { %2044 = vmatprep.mubr.bf16.mxu0 %v1004_v41 }
 0x41b   : > { %2045 = vmatmul.mubr.bf16.gmra.mrb[44].mxu0 %v1005_v40 }
 0x41c   : > { %2093 = vmatpush3.bf16.msra.mxu0 %v2255_v43 }
 0x4d6   : > { %v2034_v51 = vpop.f32.mrb[32].mxu0 }
 0x4d7   : > { %v1119_v52 = vadd.f32 %v2034_v51, %v2661_v50  ;;  %v1110_v53 = vpop.f32.mrb[33].mxu0 }
 0x4d8   : > { %v1111_v54 = vadd.f32 %v2661_v50, %v1110_v53  ;;  %v2035_v55 = vpop.f32.mrb[34].mxu0 }
 0x4d9   : > { %v1122_v56 = vadd.f32 %v2035_v55, %v2661_v50  ;;  %v1113_v57 = vpop.f32.mrb[35].mxu0  ;;  %v1175_v59 = vmax.f32 %v1119_v52, 0.0 }
 0x4da   : > { %v1114_v58 = vadd.f32 %v2661_v50, %v1113_v57  ;;  %v1173_v61 = vmax.f32 %v1111_v54, 0.0 }
 0x4db   : > { %v1176_v60 = vmax.f32 %v1122_v56, 0.0 }
 0x4dc   : > { %v1174_v62 = vmax.f32 %v1114_v58, 0.0 }
 0x4dd   : > { %v1190_v63 = vpack.c.bf16 %v1176_v60, %v1175_v59 }
 0x4de   : > { %v1189_v0 = vpack.c.bf16 %v1174_v62, %v1173_v61  ;;  %v2038_v1 = vpop.f32.mrb[36].mxu0 }
 0x4df   : > { %v1135_v2 = vadd.f32 %v2038_v1, %v2661_v50  ;;  %v1126_v3 = vpop.f32.mrb[37].mxu0 }
 0x4e0   : > { %v1127_v4 = vadd.f32 %v2661_v50, %v1126_v3  ;;  %v2039_v5 = vpop.f32.mrb[38].mxu0  ;;  %2064 = vmatprep.mubr.bf16.mxu1 %v1189_v0 }
 0x4e1   : > { %v1138_v6 = vadd.f32 %v2039_v5, %v2661_v50  ;;  %v1129_v7 = vpop.f32.mrb[39].mxu0  ;;  %2065 = vmatmul.mubr.bf16.vlgmr.msra.gmra.mrb[32].mxu1 %v1190_v63  ;;  %v1179_v9 = vmax.f32 %v1135_v2, 0.0 }
 0x4e2   : > { %v1130_v8 = vadd.f32 %v2661_v50, %v1129_v7  ;;  %2120 = vmatpush3.bf16.msra.mxu1 %v2249_v44  ;;  %v1177_v11 = vmax.f32 %v1127_v4, 0.0  ;;  %v2256_v44 = vld [vmem:[#allocation5 + $0x1b8] sm:$0xff]  }
 0x4e3   : > { %v1180_v10 = vmax.f32 %v1138_v6, 0.0  ;;  %2113 = vmatprep.subr.bf16.mxu1 %v2250_v45  ;;  %2094 = vmatprep.subr.bf16.mxu0 %v2256_v44 }
 0x4e4   : > { %v1178_v12 = vmax.f32 %v1130_v8, 0.0  ;;  %2095 = vmatpush3.bf16.msra.mxu0 %v2256_v44 }
 0x4e5   : > { %v1192_v13 = vpack.c.bf16 %v1180_v10, %v1179_v9 }
 0x4e6   : > { %v1191_v14 = vpack.c.bf16 %v1178_v12, %v1177_v11  ;;  %v2042_v15 = vpop.f32.mrb[40].mxu0  ;;  %2121 = vmatpush3.bf16.msra.mxu1 %v2250_v45  ;;  %v1751_v45 = vld [vmem:[#allocation7 + $0x5] ss:$0 sm:$0xff] }
 0x4e7   : > { %v1151_v16 = vadd.f32 %v2042_v15, %v2661_v50  ;;  %v1142_v17 = vpop.f32.mrb[41].mxu0  ;;  %2114 = vmatprep.subr.bf16.mxu1 %v2251_v46 }
 0x4e8   : > { %v1143_v18 = vadd.f32 %v2661_v50, %v1142_v17  ;;  %v2043_v19 = vpop.f32.mrb[42].mxu0  ;;  %2068 = vmatprep.mubr.bf16.mxu1 %v1191_v14 }
 0x4e9   : > { %v1154_v20 = vadd.f32 %v2043_v19, %v2661_v50  ;;  %v1145_v21 = vpop.f32.mrb[43].mxu0  ;;  %2069 = vmatmul.mubr.bf16.gmra.mrb[36].mxu1 %v1192_v13  ;;  %v1183_v23 = vmax.f32 %v1151_v16, 0.0 }
 0x4ea   : > { %v1146_v22 = vadd.f32 %v2661_v50, %v1145_v21  ;;  %2122 = vmatpush3.bf16.msra.mxu1 %v2251_v46  ;;  %v1181_v25 = vmax.f32 %v1143_v18, 0.0 }
 0x4eb   : > { %v1184_v24 = vmax.f32 %v1154_v20, 0.0  ;;  %2115 = vmatprep.subr.bf16.mxu1 %v2649_v47 }
 0x4ec   : > { %v1182_v26 = vmax.f32 %v1146_v22, 0.0 }
 0x4ed   : > { %v1194_v27 = vpack.c.bf16 %v1184_v24, %v1183_v23 }
 0x4ee   : > { %v1193_v28 = vpack.c.bf16 %v1182_v26, %v1181_v25  ;;  %v2046_v29 = vpop.f32.mrb[44].mxu0  ;;  %2123 = vmatpush3.bf16.msra.mxu1 %v2649_v47 }
 0x4ef   : > { %v1167_v30 = vadd.f32 %v2046_v29, %v2661_v50  ;;  %v1158_v31 = vpop.f32.mrb[45].mxu0  ;;  %2116 = vmatprep.subr.bf16.mxu1 %v2652_v48 }
 0x4f0   : > { %v1159_v32 = vadd.f32 %v2661_v50, %v1158_v31  ;;  %v2047_v33 = vpop.f32.mrb[46].mxu0  ;;  %2072 = vmatprep.mubr.bf16.mxu1 %v1193_v28 }
 0x4f1   : > { %v1170_v34 = vadd.f32 %v2047_v33, %v2661_v50  ;;  %v1161_v35 = vpop.f32.mrb[47].mxu0  ;;  %2073 = vmatmul.mubr.bf16.gmra.mrb[40].mxu1 %v1194_v27  ;;  %v1187_v37 = vmax.f32 %v1167_v30, 0.0 }
 0x4f2   : > { %v1162_v36 = vadd.f32 %v2661_v50, %v1161_v35  ;;  %2124 = vmatpush3.bf16.msra.mxu1 %v2652_v48  ;;  %v1185_v39 = vmax.f32 %v1159_v32, 0.0 }
 0x4f3   : > { %v1188_v38 = vmax.f32 %v1170_v34, 0.0  ;;  %2117 = vmatprep.subr.bf16.mxu1 %v2656_v49 }
 0x4f4   : > { %v1186_v40 = vmax.f32 %v1162_v36, 0.0 }
 0x4f5   : > { %v1196_v41 = vpack.c.bf16 %v1188_v38, %v1187_v37  ;;  %v1760_v38 = vld [vmem:[#allocation7 + $0x6] ss:$0 sm:$0xff] }
 0x4f6   : > { %v1195_v42 = vpack.c.bf16 %v1186_v40, %v1185_v39  ;;  %2125 = vmatpush3.bf16.msra.mxu1 %v2656_v49 }
 0x4f7   : > { %2118 = vmatprep.subr.bf16.mxu1 %v2255_v43 }
 0x4f8   : > { %2076 = vmatprep.mubr.bf16.mxu1 %v1195_v42 }
 0x4f9   : > { %2077 = vmatmul.mubr.bf16.gmra.mrb[44].mxu1 %v1196_v41 }
 0x4fa   : > { %2126 = vmatpush3.bf16.msra.mxu1 %v2255_v43 }
 0x4fb   : > { %2119 = vmatprep.subr.bf16.mxu1 %v2256_v44 }
 0x4fe   : > { %2127 = vmatpush3.bf16.msra.mxu1 %v2256_v44 }
 0x5b4   : > { %v2066_v46 = vpop.f32.mrb[32].mxu1 }
 0x5b5   : > { %v1310_v47 = vadd.f32 %v2066_v46, %v1751_v45  ;;  %v1301_v48 = vpop.f32.mrb[33].mxu1 }
 0x5b6   : > { %v1302_v50 = vadd.f32 %v1751_v45, %v1301_v48  ;;  %v2067_v51 = vpop.f32.mrb[34].mxu1 }
 0x5b7   : > { %v1313_v52 = vadd.f32 %v2067_v51, %v1751_v45  ;;  %v1304_v49 = vpop.f32.mrb[35].mxu1  ;;  %v1366_v54 = vmax.f32 %v1310_v47, 0.0 }
 0x5b8   : > { %v1305_v53 = vadd.f32 %v1751_v45, %v1304_v49  ;;  %v1364_v56 = vmax.f32 %v1302_v50, 0.0 }
 0x5b9   : > { %v1367_v55 = vmax.f32 %v1313_v52, 0.0 }
 0x5ba   : > { %v1365_v57 = vmax.f32 %v1305_v53, 0.0 }
 0x5bb   : > { %v1381_v58 = vpack.c.bf16 %v1367_v55, %v1366_v54 }
 0x5bc   : > { %v1380_v59 = vpack.c.bf16 %v1365_v57, %v1364_v56  ;;  %v2070_v60 = vpop.f32.mrb[36].mxu1 }
 0x5bd   : > { %v1326_v61 = vadd.f32 %v2070_v60, %v1751_v45  ;;  %v1317_v62 = vpop.f32.mrb[37].mxu1 }
 0x5be   : > { %v1318_v63 = vadd.f32 %v1751_v45, %v1317_v62  ;;  %v2071_v0 = vpop.f32.mrb[38].mxu1  ;;  %2096 = vmatprep.mubr.bf16.mxu0 %v1380_v59 }
 0x5bf   : > { %v1329_v1 = vadd.f32 %v2071_v0, %v1751_v45  ;;  %v1320_v2 = vpop.f32.mrb[39].mxu1  ;;  %2097 = vmatmul.mubr.bf16.vlgmr.msra.gmra.mrb[48].mxu0 %v1381_v58  ;;  %v1370_v4 = vmax.f32 %v1326_v61, 0.0 }
 0x5c0   : > { %v1321_v3 = vadd.f32 %v1751_v45, %v1320_v2  ;;  %v1368_v6 = vmax.f32 %v1318_v63, 0.0 }
 0x5c1   : > { %v1371_v5 = vmax.f32 %v1329_v1, 0.0 }
 0x5c2   : > { %v1369_v7 = vmax.f32 %v1321_v3, 0.0 }
 0x5c3   : > { %v1383_v8 = vpack.c.bf16 %v1371_v5, %v1370_v4 }
 0x5c4   : > { %v1382_v9 = vpack.c.bf16 %v1369_v7, %v1368_v6  ;;  %v2074_v10 = vpop.f32.mrb[40].mxu1 }
 0x5c5   : > { %v1342_v11 = vadd.f32 %v2074_v10, %v1751_v45  ;;  %v1333_v12 = vpop.f32.mrb[41].mxu1 }
 0x5c6   : > { %v1334_v13 = vadd.f32 %v1751_v45, %v1333_v12  ;;  %v2075_v14 = vpop.f32.mrb[42].mxu1  ;;  %2100 = vmatprep.mubr.bf16.mxu0 %v1382_v9 }
 0x5c7   : > { %v1345_v15 = vadd.f32 %v2075_v14, %v1751_v45  ;;  %v1336_v16 = vpop.f32.mrb[43].mxu1  ;;  %2101 = vmatmul.mubr.bf16.gmra.mrb[52].mxu0 %v1383_v8  ;;  %v1374_v18 = vmax.f32 %v1342_v11, 0.0 }
 0x5c8   : > { %v1337_v17 = vadd.f32 %v1751_v45, %v1336_v16  ;;  %v1372_v20 = vmax.f32 %v1334_v13, 0.0 }
 0x5c9   : > { %v1375_v19 = vmax.f32 %v1345_v15, 0.0 }
 0x5ca   : > { %v1373_v21 = vmax.f32 %v1337_v17, 0.0 }
 0x5cb   : > { %v1385_v22 = vpack.c.bf16 %v1375_v19, %v1374_v18 }
 0x5cc   : > { %v1384_v23 = vpack.c.bf16 %v1373_v21, %v1372_v20  ;;  %v2078_v24 = vpop.f32.mrb[44].mxu1 }
 0x5cd   : > { %v1358_v25 = vadd.f32 %v2078_v24, %v1751_v45  ;;  %v1349_v26 = vpop.f32.mrb[45].mxu1 }
 0x5ce   : > { %v1350_v27 = vadd.f32 %v1751_v45, %v1349_v26  ;;  %v2079_v28 = vpop.f32.mrb[46].mxu1  ;;  %2104 = vmatprep.mubr.bf16.mxu1 %v1384_v23 }
 0x5cf   : > { %v1361_v29 = vadd.f32 %v2079_v28, %v1751_v45  ;;  %v1352_v30 = vpop.f32.mrb[47].mxu1  ;;  %2105 = vmatmul.mubr.bf16.vlgmr.msra.gmra.mrb[48].mxu1 %v1385_v22  ;;  %v1378_v32 = vmax.f32 %v1358_v25, 0.0 }
 0x5d0   : > { %v1353_v31 = vadd.f32 %v1751_v45, %v1352_v30  ;;  %v1376_v34 = vmax.f32 %v1350_v27, 0.0 }
 0x5d1   : > { %v1379_v33 = vmax.f32 %v1361_v29, 0.0 }
 0x5d2   : > { %v1377_v35 = vmax.f32 %v1353_v31, 0.0 }
 0x5d3   : > { %v1387_v36 = vpack.c.bf16 %v1379_v33, %v1378_v32 }
 0x5d4   : > { %v1386_v37 = vpack.c.bf16 %v1377_v35, %v1376_v34 }
 0x5d6   : > { %2108 = vmatprep.mubr.bf16.mxu1 %v1386_v37 }
 0x5d7   : > { %2109 = vmatmul.mubr.bf16.gmra.mrb[52].mxu1 %v1387_v36 }
 0x692   : > { %v2098_v39 = vpop.f32.mrb[48].mxu0 }
 0x693   : > { %v1501_v40 = vadd.f32 %v2098_v39, %v1760_v38  ;;  %v1492_v41 = vpop.f32.mrb[49].mxu0 }
 0x694   : > { %v1493_v42 = vadd.f32 %v1760_v38, %v1492_v41  ;;  %v2099_v43 = vpop.f32.mrb[50].mxu0 }
 0x695   : > { %v1557_v44 = vmax.f32 %v1501_v40, 0.0  ;;  %v1504_v46 = vadd.f32 %v2099_v43, %v1760_v38  ;;  %v1495_v47 = vpop.f32.mrb[51].mxu0 }
 0x696   : > { %v1555_v48 = vmax.f32 %v1493_v42, 0.0  ;;  %v1496_v45 = vadd.f32 %v1760_v38, %v1495_v47 }
 0x697   : > { %1573 = vst [vmem:[%s2687_s18 + $0x10] sm:$0xff] %v1557_v44  ;;  %v1558_v50 = vmax.f32 %v1504_v46, 0.0 }
 0x698   : > { %1571 = vst [vmem:[%s2687_s18] sm:$0xff] %v1555_v48  ;;  %v1556_v51 = vmax.f32 %v1496_v45, 0.0 }
 0x699   : > { %1574 = vst [vmem:[%s2687_s18 + $0x18] sm:$0xff] %v1558_v50 }
 0x69a   : > { %1572 = vst [vmem:[%s2687_s18 + $0x8] sm:$0xff] %v1556_v51  ;;  %v2102_v52 = vpop.f32.mrb[52].mxu0 }
 0x69b   : > { %v1517_v49 = vadd.f32 %v2102_v52, %v1760_v38  ;;  %v1508_v53 = vpop.f32.mrb[53].mxu0 }
 0x69c   : > { %v1509_v54 = vadd.f32 %v1760_v38, %v1508_v53  ;;  %v2103_v55 = vpop.f32.mrb[54].mxu0 }
 0x69d   : > { %v1561_v56 = vmax.f32 %v1517_v49, 0.0  ;;  %v1520_v57 = vadd.f32 %v2103_v55, %v1760_v38  ;;  %v1511_v58 = vpop.f32.mrb[55].mxu0 }
 0x69e   : > { %v1559_v59 = vmax.f32 %v1509_v54, 0.0  ;;  %v1512_v60 = vadd.f32 %v1760_v38, %v1511_v58 }
 0x69f   : > { %1577 = vst [vmem:[%s2687_s18 + $0x30] sm:$0xff] %v1561_v56  ;;  %v1562_v61 = vmax.f32 %v1520_v57, 0.0 }
 0x6a0   : > { %1575 = vst [vmem:[%s2687_s18 + $0x20] sm:$0xff] %v1559_v59  ;;  %v1560_v62 = vmax.f32 %v1512_v60, 0.0 }
 0x6a1   : > { %1578 = vst [vmem:[%s2687_s18 + $0x38] sm:$0xff] %v1562_v61 }
 0x6a2   : > { %1576 = vst [vmem:[%s2687_s18 + $0x28] sm:$0xff] %v1560_v62  ;;  %v2106_v63 = vpop.f32.mrb[48].mxu1 }
 0x6a3   : > { %v1533_v0 = vadd.f32 %v2106_v63, %v1760_v38  ;;  %v1524_v1 = vpop.f32.mrb[49].mxu1 }
 0x6a4   : > { %v1525_v2 = vadd.f32 %v1760_v38, %v1524_v1  ;;  %v2107_v3 = vpop.f32.mrb[50].mxu1 }
 0x6a5   : > { %v1565_v4 = vmax.f32 %v1533_v0, 0.0  ;;  %v1536_v5 = vadd.f32 %v2107_v3, %v1760_v38  ;;  %v1527_v6 = vpop.f32.mrb[51].mxu1 }
 0x6a6   : > { %v1563_v7 = vmax.f32 %v1525_v2, 0.0  ;;  %v1528_v8 = vadd.f32 %v1760_v38, %v1527_v6 }
 0x6a7   : > { %1581 = vst [vmem:[%s2687_s18 + $0x50] sm:$0xff] %v1565_v4  ;;  %v1566_v9 = vmax.f32 %v1536_v5, 0.0 }
 0x6a8   : > { %1579 = vst [vmem:[%s2687_s18 + $0x40] sm:$0xff] %v1563_v7  ;;  %v1564_v10 = vmax.f32 %v1528_v8, 0.0 }
 0x6a9   : > { %1582 = vst [vmem:[%s2687_s18 + $0x58] sm:$0xff] %v1566_v9 }
 0x6aa   : > { %1580 = vst [vmem:[%s2687_s18 + $0x48] sm:$0xff] %v1564_v10  ;;  %v2110_v11 = vpop.f32.mrb[52].mxu1 }
 0x6ab   : > { %v1549_v12 = vadd.f32 %v2110_v11, %v1760_v38  ;;  %v1540_v13 = vpop.f32.mrb[53].mxu1 }
 0x6ac   : > { %v1541_v14 = vadd.f32 %v1760_v38, %v1540_v13  ;;  %v2111_v15 = vpop.f32.mrb[54].mxu1 }
 0x6ad   : > { %v1569_v16 = vmax.f32 %v1549_v12, 0.0  ;;  %v1552_v17 = vadd.f32 %v2111_v15, %v1760_v38  ;;  %v1543_v18 = vpop.f32.mrb[55].mxu1 }
 0x6ae   : > { %v1567_v19 = vmax.f32 %v1541_v14, 0.0  ;;  %v1544_v20 = vadd.f32 %v1760_v38, %v1543_v18 }
 0x6af   : > { %1585 = vst [vmem:[%s2687_s18 + $0x70] sm:$0xff] %v1569_v16  ;;  %v1570_v21 = vmax.f32 %v1552_v17, 0.0 }
 0x6b0   : > { %1583 = vst [vmem:[%s2687_s18 + $0x60] sm:$0xff] %v1567_v19  ;;  %v1568_v22 = vmax.f32 %v1544_v20, 0.0 }
 0x6b1   : > { %1586 = vst [vmem:[%s2687_s18 + $0x78] sm:$0xff] %v1570_v21 }
 0x6b2   : > { %1584 = vst [vmem:[%s2687_s18 + $0x68] sm:$0xff] %v1568_v22 }
 0x6b3   : > { %2356 = shalt.err (!%p2353_p2)
}
 0x6b4   : > { %s2357_s25 = scalar_lea.hbm %s2707_s27, 2048  ;;  %s2361_s21 = scalar_lea.hbm %s2759_s3, 4096 }
 0x6b5   : > { %p2358_p13 = scmp.ne.s32.totalorder %s2707_s27, %s2357_s25  ;;  %p2362_p4 = scmp.lt.u32.totalorder %s2707_s27, %s2759_s3 }
 0x6b6   : > { %p2363_p5 = scmp.lt.u32.totalorder %s2361_s21, %s2357_s25  ;;  %p2365_p11 = scmp.lt.u32.totalorder %s2357_s25, %s2707_s27 }
 0x6b7   : > { %p2359_p6 = pnand %p2358_p13, %p2773_p0 }
 0x6b8   : > { %p2364_p8 = por %p2363_p5, %p2362_p4 }
 0x6b9   : > { %p2360_p10 = pneg %p2359_p6 }
 0x6ba   : > { %p2366_p1 = por %p2365_p11, %p2364_p8 }
 0x6bc   : > { %p2367_p3 = pnand %p2366_p1, %p2360_p10 }
 0x6be   : > { %2370 = shalt.err (!%p2367_p3)
}
 0x6bf   : > { %s2423_s30 = smov 128   ;;  %s2424_s18 = smov 8  }
 0x6c0   : > { %2138 = dma.vmem_to_hbm [thread:$0]  (%p2773_p0), %s2709_s17, 2048, %s2707_s27, %s1588_s16, %s2423_s30, %s2423_s30, %s2424_s18  }
 0x6c1 PF: > { %s1616_s20 = sand.u32 1, %s2401_s12   ;;  %p2774_p7 = scmp.ne.s32.totalorder %s2764_s19, 0 }
 0x6c2   : > { %p2775_p9 = scmp.ge.s32.totalorder %s2413_s15, 2  ;;  %s1617_s24 = scalar_lea.sflag [#allocation4], %s1616_s20 }
 0x6c4   : > { %p2152_p12 = pnand %p2775_p9, %p2774_p7 }
 0x6c6   : > { %2396 = dma.done.wait (!%p2152_p12), %s1617_s24, 2048  }
 0x6c7   : > { %2398 = vsyncadd (!%p2152_p12), %s1617_s24, 4294965248  ;;  %p17_p2 = scmp.ge.s32.totalorder %s2555_s4, 4   ;;  %s2776_s12 = smov %s2405_s13 }
 0x6c8   : > { %s2777_s13 = smov %s2409_s14  ;;  %s2778_s14 = smov %s2571_s7 }
 0x6c9   : > { %s2779_s15 = smov %s2555_s4  ;;  %19 = sbr.rel (!%p17_p2) target bundleno = 6 (0x6), region = 91 }
 0x6d0   :  { %1622 = vsyncpa [#allocation3], 1 }
 0x6d1   :  { %1624 = vsyncpa [#allocation3 + $0x1], 1 }
 0x6d2   :  { %1625 = vsyncpa [#allocation6], 1 }
 0x6d3   :  { %1626 = vsyncpa [#allocation4], 1 }
 0x6d4   :  { %1628 = vsyncpa [#allocation4 + $0x1], 1 }

// kernel: tpu_custom_call.1
= control target key start
LH: loop header
LB: loop body
LE: loop exit
PB: predicated region body
PF: predicated region fallthrough
CT: control target
= control target key end

     0   :  { %8 = vsyncpa [#allocation3], 0  ;;  %s2756_s0 = inlined_call_operand.hbm [shape: f32[256,128], index: 0, kind: input, shape index: {}]   ;;  %s2757_s1 = inlined_call_operand.hbm [shape: bf16[7,128,128], index: 1, kind: input, shape index: {}]   ;;  %s2758_s2 = inlined_call_operand.hbm [shape: f32[7,128], index: 2, kind: input, shape index: {}]   ;;  %s2759_s3 = inlined_call_operand.hbm [shape: f32[256,128], index: 3, kind: output, shape index: {}]  }
   0x1   :  { %10 = vsyncpa [#allocation3 + $0x1], 0 }
   0x2   :  { %11 = vsyncpa [#allocation6], 0 }
   0x3   :  { %12 = vsyncpa [#allocation4], 0 }
   0x4   :  { %14 = vsyncpa [#allocation4 + $0x1], 0  ;;  %s2445_s12 = smov 0   ;;  %s2447_s13 = smov 0  }
   0x5   :  { %s2449_s14 = smov 0   ;;  %s2451_s15 = smov 0  }
   0x6 LB: > { %s2466_s16 = sadd.s32 4294967295, %s2413_s15   ;;  %s1693_s17 = sadd.s32 4294967294, %s2413_s15   ;;  %s2413_s15 = sphi %s2451_s15, %s2779_s15   ;;  %s2409_s14 = sphi %s2449_s14, %s2778_s14   ;;  %s2405_s13 = sphi %s2447_s13, %s2777_s13   ;;  %s2401_s12 = sphi %s2445_s12, %s2776_s12  }
   0x7   : > { %p40_p0 = scmp.ne.s32.totalorder %s2405_s13, %s2401_s12  ;;  %p2760_p1 = scmp.eq.s32.totalorder %s2466_s16, 0 }
   0x8   : > { %p112_p3 = scmp.eq.s32.totalorder %s1693_s17, 1  ;;  %p1694_p5 = scmp.ge.s32.totalorder %s2413_s15, 1 }
   0x9   : > { %p2475_p4 = por %p2760_p1, %p40_p0  ;;  %p119_p7 = scmp.lt.s32.totalorder %s2413_s15, 3 }
   0xa   : > { %p2480_p6 = por %p112_p3, %p40_p0  ;;  %s2415_s21 = smov [#allocation5]  }
   0xb   : > { %s2763_s18 = scalar_select %p2475_p4, 1, 0 }
   0xc   : > { %s2764_s19 = scalar_select %p2480_p6, 1, 0 }
   0xd   : > { %p2485_p8 = pnand %p1694_p5, %p119_p7  ;;  %s131_s22 = sshll.u32 %s2415_s21, 4  ;;  %s2489_s22 = int_to_ptr.vmem [resolvable:$true] %s131_s22 }
   0xe   : > { %s2416_s24 = smov [#allocation7]   ;;  %s2257_s28 = scalar_lea.hbm %s2757_s1, 7168 }
   0xf   : > { %p2140_p9 = pneg %p2485_p8  ;;  %s145_s25 = sshll.u32 %s2416_s24, 4  ;;  %s2500_s25 = int_to_ptr.vmem [resolvable:$true] %s145_s25 }
  0x10   : > { %p2258_p12 = scmp.ne.s32.totalorder %s2757_s1, %s2257_s28  ;;  %p2264_p5 = scmp.lt.u32.totalorder %s2257_s28, %s2757_s1 }
  0x11   : > { %p2496_p11 = pnand %p2140_p9, %p2760_p1 }
  0x13   : > { %p2259_p13 = pneg %p2496_p11 }
  0x15   : > { %p2260_p0 = pnand %p2259_p13, %p2258_p12 }
  0x17   : > { %p2261_p3 = pneg %p2260_p0 }
  0x19   : > { %p2266_p7 = pnand %p2264_p5, %p2261_p3 }
  0x1b   : > { %2269 = shalt.err (!%p2266_p7)
}
  0x1c   : > { %s2270_s6 = scalar_lea.vmem %s2489_s22, 7168  ;;  %p2278_p2 = scmp.lt.s32.totalorder %s2489_s22, %s2489_s22 }
  0x1d   : > { %p2271_p9 = scmp.ne.s32.totalorder %s2489_s22, %s2270_s6  ;;  %p2279_p12 = scmp.lt.s32.totalorder %s2270_s6, %s2270_s6 }
  0x1f   : > { %p2273_p10 = pnand %p2271_p9, %p2259_p13  ;;  %p2280_p0 = por %p2279_p12, %p2278_p2 }
  0x21   : > { %p2274_p1 = pneg %p2273_p10 }
  0x23   : > { %p2281_p6 = pnand %p2280_p0, %p2274_p1 }
  0x25   : > { %2284 = shalt.err (!%p2281_p6)
}
  0x26   : > { %s2417_s7 = smov 64   ;;  %s2418_s8 = smov 4  }
  0x27   : > { %2143 = dma.hbm_to_vmem [thread:$0]  (!%p2496_p11), %s2757_s1, 7168, %s2489_s22, [#allocation6], %s2417_s7, %s2417_s7, %s2418_s8  }
  0x28   : > { %s2285_s21 = scalar_lea.hbm %s2758_s2, 128 }
  0x29   : > { %p2286_p2 = scmp.ne.s32.totalorder %s2758_s2, %s2285_s21  ;;  %p2292_p10 = scmp.lt.u32.totalorder %s2285_s21, %s2758_s2 }
  0x2b   : > { %p2288_p1 = pnand %p2286_p2, %p2259_p13 }
  0x2d   : > { %p2289_p6 = pneg %p2288_p1 }
  0x2f   : > { %p2294_p3 = pnand %p2292_p10, %p2289_p6 }
  0x31   : > { %2297 = shalt.err (!%p2294_p3)
}
  0x32   : > { %s2298_s22 = scalar_lea.vmem %s2500_s25, 128  ;;  %p2306_p12 = scmp.lt.s32.totalorder %s2500_s25, %s2500_s25 }
  0x33   : > { %p2299_p5 = scmp.ne.s32.totalorder %s2500_s25, %s2298_s22  ;;  %p2307_p0 = scmp.lt.s32.totalorder %s2298_s22, %s2298_s22 }
  0x35   : > { %p2301_p7 = pnand %p2299_p5, %p2259_p13  ;;  %p2308_p2 = por %p2307_p0, %p2306_p12 }
  0x37   : > { %p2302_p9 = pneg %p2301_p7 }
  0x39   : > { %p2309_p1 = pnand %p2308_p2, %p2302_p9 }
  0x3b   : > { %2312 = shalt.err (!%p2309_p1)
}
  0x3c   : > { %2146 = dma.hbm_to_vmem [thread:$0]  (!%p2496_p11), %s2758_s2, 128, %s2500_s25, [#allocation6]  }
  0x3d   : > { %s2555_s4 = sadd.s32 1, %s2413_s15   ;;  %s27_s23 = sadd.s32 1, %s2409_s14 }
  0x3e   : > { %s24_s5 = ssub.s32 %s2413_s15, %s2555_s4  ;;  %p34_p13 = scmp.ne.s32.totalorder %s2409_s14, %s2405_s13 }
  0x3f   : > { %p25_p6 = scmp.eq.s32.totalorder %s24_s5, 0  ;;  %p35_p10 = scmp.eq.s32.totalorder %s2413_s15, 0 }
  0x40   : > { %p2767_p3 = scmp.eq.s32.totalorder %s2466_s16, 1  ;;  %p2157_p7 = scmp.lt.s32.totalorder %s2413_s15, 2 }
  0x41   : > { %s2571_s7 = scalar_select %p25_p6, %s2409_s14, %s27_s23  }
  0x42   : > { %p2565_p5 = por %p2767_p3, %p34_p13  ;;  %p36_p9 = por %p35_p10, %p34_p13 }
  0x43   : > { %s156_s8 = sand.u32 1, %s2409_s14   ;;  %s1774_s25 = sshll.u32 %s2413_s15, 11 }
  0x44   : > { %s2768_s6 = scalar_select %p2565_p5, 1, 0 }
  0x45   : > { %s1698_s9 = sshll.u32 %s156_s8, 7  ;;  %s2578_s17 = scalar_lea.hbm %s2756_s0, %s1774_s25 }
  0x46   : > { %s160_s21 = scalar_lea.vmem [#allocation2], %s1698_s9  ;;  %p2582_p11 = pnand %p2157_p7, %p36_p9 }
  0x47   : > { %s167_s24 = sshll.u32 %s160_s21, 4  ;;  %s2586_s27 = scalar_lea.sflag [#allocation3], %s156_s8  ;;  %s2580_s24 = int_to_ptr.vmem [resolvable:$true] %s167_s24 }
  0x48   : > { %s2313_s28 = scalar_lea.hbm %s2578_s17, 2048  ;;  %p2315_p0 = pneg %p2582_p11 }
  0x49   : > { %p2314_p12 = scmp.ne.s32.totalorder %s2578_s17, %s2313_s28  ;;  %s2318_s30 = scalar_lea.hbm %s2756_s0, 4096 }
  0x4a   : > { %p2319_p13 = scmp.lt.u32.totalorder %s2578_s17, %s2756_s0  ;;  %p2320_p6 = scmp.lt.u32.totalorder %s2318_s30, %s2313_s28 }
  0x4b   : > { %p2316_p2 = pnand %p2315_p0, %p2314_p12  ;;  %p2322_p3 = scmp.lt.u32.totalorder %s2313_s28, %s2578_s17 }
  0x4c   : > { %p2321_p10 = por %p2320_p6, %p2319_p13 }
  0x4d   : > { %p2317_p1 = pneg %p2316_p2 }
  0x4e   : > { %p2323_p7 = por %p2322_p3, %p2321_p10 }
  0x50   : > { %p2324_p9 = pnand %p2323_p7, %p2317_p1 }
  0x52   : > { %2327 = shalt.err (!%p2324_p9)
}
  0x53   : > { %s2328_s8 = scalar_lea.vmem %s2580_s24, 2048  ;;  %s2419_s9 = smov [#allocation2]  }
  0x54   : > { %p2329_p12 = scmp.ne.s32.totalorder %s2580_s24, %s2328_s8  ;;  %s2333_s25 = sshll.u32 %s2419_s9, 4  ;;  %s2334_s25 = int_to_ptr.vmem [resolvable:$false] %s2333_s25 }
  0x55   : > { %s2335_s10 = scalar_lea.vmem %s2334_s25, 4096  ;;  %p2336_p4 = scmp.lt.s32.totalorder %s2580_s24, %s2334_s25 }
  0x56   : > { %p2331_p2 = pnand %p2329_p12, %p2315_p0  ;;  %p2337_p13 = scmp.lt.s32.totalorder %s2335_s10, %s2328_s8 }
  0x58   : > { %p2332_p5 = pneg %p2331_p2  ;;  %p2338_p6 = por %p2337_p13, %p2336_p4 }
  0x5a   : > { %p2339_p10 = pnand %p2338_p6, %p2332_p5 }
  0x5c   : > { %2342 = shalt.err (!%p2339_p10)
}
  0x5d   : > { %s2420_s11 = smov 128   ;;  %s2421_s21 = smov 8  }
  0x5e   : > { %2150 = dma.hbm_to_vmem [thread:$0]  (!%p2582_p11), %s2578_s17, 2048, %s2580_s24, %s2586_s27, %s2420_s11, %s2420_s11, %s2421_s21  }
  0x5f   : > { %179 = sbr.rel (%p2485_p8) target bundleno = 1729 (0x6c1), region = 32  ;;  %s2617_s28 = sand.u32 (!%p2485_p8), 1, %s2405_s13  }
  0x60   : > { %s1702_s22 = sshll.u32 (!%p2485_p8), %s2617_s28, 7  ;;  %s182_s29 = scalar_lea.sflag (!%p2485_p8), [#allocation3], %s2617_s28 }
  0x61   : > { %s2623_s30 = scalar_lea.vmem (!%p2485_p8), [#allocation2], %s1702_s22  ;;  %p2770_p4 = scmp.ne.s32.totalorder (!%p2485_p8), %s2763_s18, 0 }
  0x66   : > { %2388 = dma.done.wait (%p2770_p4), %s182_s29, 2048  }
  0x67   : > { %2390 = vsyncadd (%p2770_p4), %s182_s29, 4294965248  ;;  %p2771_p5 = scmp.eq.s32.totalorder %s2466_s16, 0 }
  0x69   : > { %2392 = dma.done.wait (%p2771_p5), [#allocation6], 7296   ;;  %p2772_p8 = pmov %p2771_p5 }
  0x6a   : > { %v2201_v0 = vld [vmem:[#allocation5] sm:$0xff]   ;;  %v2202_v1 = vld [vmem:[#allocation5 + $0x8] sm:$0xff]   ;;  %v2203_v2 = vld [vmem:[#allocation5 + $0x10] sm:$0xff]   ;;  %s2687_s18 = scalar_lea.vmem [#allocation8], %s1702_s22  ;;  %s1775_s20 = sshll.u32 %s2466_s16, 11 }
  0x6b   : > { %2394 = vsyncadd (%p2772_p8), [#allocation6], 4294960000  ;;  %1888 = vmatprep.subr.bf16.mxu0 %v2201_v0  ;;  %v2204_v3 = vld [vmem:[#allocation5 + $0x18] sm:$0xff]   ;;  %v219_v4 = vld [vmem:[%s2623_s30] sm:$0xff]  ;;  %s1601_s17 = sshll.u32 %s2687_s18, 4  ;;  %s2707_s27 = scalar_lea.hbm %s2759_s3, %s1775_s20  ;;  %s2709_s17 = int_to_ptr.vmem [resolvable:$true] %s1601_s17 }
  0x6c   : > { %1889 = vmatpush3.bf16.msra.mxu0 %v2201_v0  ;;  %v220_v5 = vld [vmem:[%s2623_s30 + $0x8] sm:$0xff]  ;;  %v2205_v7 = vld [vmem:[#allocation5 + $0x20] sm:$0xff]   ;;  %v2211_v11 = vld [vmem:[#allocation5 + $0x50] sm:$0xff]   ;;  %s1588_s16 = scalar_lea.sflag [#allocation4], %s2617_s28  ;;  %s2343_s23 = scalar_lea.vmem %s2709_s17, 2048 }
  0x6d   : > { %1890 = vmatprep.subr.bf16.mxu0 %v2202_v1  ;;  %v235_v6 = vpack.c.bf16 %v220_v5, %v219_v4  ;;  %v2209_v8 = vld [vmem:[#allocation5 + $0x40] sm:$0xff]   ;;  %v2210_v9 = vld [vmem:[#allocation5 + $0x48] sm:$0xff]   ;;  %v2207_v12 = vld [vmem:[#allocation5 + $0x30] sm:$0xff]   ;;  %p2344_p11 = scmp.ne.s32.totalorder %s2709_s17, %s2343_s23  ;;  %p2773_p0 = scmp.ne.s32.totalorder %s2768_s6, 0 }
  0x6e   : > { %v2206_v10 = vld [vmem:[#allocation5 + $0x28] sm:$0xff]   ;;  %1920 = vmatprep.subr.bf16.mxu1 %v2209_v8  ;;  %v2212_v13 = vld [vmem:[#allocation5 + $0x58] sm:$0xff]   ;;  %v2213_v15 = vld [vmem:[#allocation5 + $0x60] sm:$0xff]   ;;  %s2422_s5 = smov [#allocation8]  }
  0x6f   : > { %1904 = vmatprep.mubr.bf16.mxu0 %v235_v6  ;;  %1921 = vmatpush3.bf16.msra.mxu1 %v2209_v8  ;;  %v2208_v14 = vld [vmem:[#allocation5 + $0x38] sm:$0xff]   ;;  %v221_v16 = vld [vmem:[%s2623_s30 + $0x10] sm:$0xff]  ;;  %v223_v18 = vld [vmem:[%s2623_s30 + $0x20] sm:$0xff]  ;;  %p2345_p1 = pnand %p2344_p11, %p2773_p0  ;;  %s2347_s8 = sshll.u32 %s2422_s5, 4  ;;  %s2348_s8 = int_to_ptr.vmem [resolvable:$false] %s2347_s8 }
  0x70   : > { %1891 = vmatpush3.bf16.msra.mxu0 %v2202_v1  ;;  %1922 = vmatprep.subr.bf16.mxu1 %v2210_v9  ;;  %v222_v17 = vld [vmem:[%s2623_s30 + $0x18] sm:$0xff]  ;;  %v224_v19 = vld [vmem:[%s2623_s30 + $0x28] sm:$0xff]  ;;  %v225_v23 = vld [vmem:[%s2623_s30 + $0x30] sm:$0xff]  ;;  %s2349_s9 = scalar_lea.vmem %s2348_s8, 4096  ;;  %p2350_p7 = scmp.lt.s32.totalorder %s2709_s17, %s2348_s8 }
  0x71   : > { %1892 = vmatprep.subr.bf16.mxu0 %v2203_v2  ;;  %v2214_v20 = vld [vmem:[#allocation5 + $0x68] sm:$0xff]   ;;  %v236_v21 = vpack.c.bf16 %v222_v17, %v221_v16  ;;  %v237_v22 = vpack.c.bf16 %v224_v19, %v223_v18  ;;  %v226_v24 = vld [vmem:[%s2623_s30 + $0x38] sm:$0xff]  ;;  %v227_v25 = vld [vmem:[%s2623_s30 + $0x40] sm:$0xff]  ;;  %p2346_p3 = pneg %p2345_p1  ;;  %p2351_p9 = scmp.lt.s32.totalorder %s2349_s9, %s2343_s23 }
  0x72   : > { %v228_v26 = vld [vmem:[%s2623_s30 + $0x48] sm:$0xff]  ;;  %v238_v27 = vpack.c.bf16 %v226_v24, %v225_v23  ;;  %v229_v29 = vld [vmem:[%s2623_s30 + $0x50] sm:$0xff]  ;;  %v230_v30 = vld [vmem:[%s2623_s30 + $0x58] sm:$0xff] }
  0x73   : > { %1923 = vmatpush3.bf16.msra.mxu1 %v2210_v9  ;;  %v239_v28 = vpack.c.bf16 %v228_v26, %v227_v25  ;;  %v231_v31 = vld [vmem:[%s2623_s30 + $0x60] sm:$0xff]  ;;  %v232_v32 = vld [vmem:[%s2623_s30 + $0x68] sm:$0xff]  ;;  %v240_v33 = vpack.c.bf16 %v230_v30, %v229_v29  ;;  %v233_v35 = vld [vmem:[%s2623_s30 + $0x70] sm:$0xff]  ;;  %p2352_p12 = por %p2351_p9, %p2350_p7 }
  0x74   : > { %1893 = vmatpush3.bf16.msra.mxu0 %v2203_v2  ;;  %1924 = vmatprep.subr.bf16.mxu1 %v2211_v11  ;;  %v241_v34 = vpack.c.bf16 %v232_v32, %v231_v31  ;;  %v234_v36 = vld [vmem:[%s2623_s30 + $0x78] sm:$0xff]  ;;  %v2215_v38 = vld [vmem:[#allocation5 + $0x70] sm:$0xff]   ;;  %v2217_v40 = vld [vmem:[#allocation5 + $0x80] sm:$0xff]  }
  0x75   : > { %1894 = vmatprep.subr.bf16.mxu0 %v2204_v3  ;;  %v242_v37 = vpack.c.bf16 %v234_v36, %v233_v35  ;;  %v2216_v39 = vld [vmem:[#allocation5 + $0x78] sm:$0xff]   ;;  %v2218_v41 = vld [vmem:[#allocation5 + $0x88] sm:$0xff]   ;;  %v2219_v42 = vld [vmem:[#allocation5 + $0x90] sm:$0xff]   ;;  %p2353_p2 = pnand %p2352_p12, %p2346_p3 }
  0x76   : > { %v2220_v43 = vld [vmem:[#allocation5 + $0x98] sm:$0xff]   ;;  %v2221_v44 = vld [vmem:[#allocation5 + $0xa0] sm:$0xff]   ;;  %v2222_v45 = vld [vmem:[#allocation5 + $0xa8] sm:$0xff]  }
  0x77   : > { %1925 = vmatpush3.bf16.msra.mxu1 %v2211_v11  ;;  %v1706_v46 = vld [vmem:[#allocation7] ss:$0 sm:$0xff] }
  0x78   : > { %1895 = vmatpush3.bf16.msra.mxu0 %v2204_v3  ;;  %1926 = vmatprep.subr.bf16.mxu1 %v2212_v13 }
  0x79   : > { %1896 = vmatprep.subr.bf16.mxu0 %v2205_v7 }
  0x7b   : > { %1927 = vmatpush3.bf16.msra.mxu1 %v2212_v13 }
  0x7c   : > { %1897 = vmatpush3.bf16.msra.mxu0 %v2205_v7  ;;  %1928 = vmatprep.subr.bf16.mxu1 %v2213_v15 }
  0x7d   : > { %1898 = vmatprep.subr.bf16.mxu0 %v2206_v10 }
  0x7f   : > { %1929 = vmatpush3.bf16.msra.mxu1 %v2213_v15 }
  0x80   : > { %1899 = vmatpush3.bf16.msra.mxu0 %v2206_v10  ;;  %1930 = vmatprep.subr.bf16.mxu1 %v2214_v20 }
  0x81   : > { %1900 = vmatprep.subr.bf16.mxu0 %v2207_v12 }
  0x83   : > { %1931 = vmatpush3.bf16.msra.mxu1 %v2214_v20 }
  0x84   : > { %1901 = vmatpush3.bf16.msra.mxu0 %v2207_v12  ;;  %1932 = vmatprep.subr.bf16.mxu1 %v2215_v38 }
  0x85   : > { %1902 = vmatprep.subr.bf16.mxu0 %v2208_v14 }
  0x87   : > { %1933 = vmatpush3.bf16.msra.mxu1 %v2215_v38 }
  0x88   : > { %1903 = vmatpush3.bf16.msra.mxu0 %v2208_v14  ;;  %1934 = vmatprep.subr.bf16.mxu1 %v2216_v39 }
  0x89   : > { %1952 = vmatprep.subr.bf16.mxu0 %v2217_v40 }
  0x8b   : > { %1905 = vmatmul.mubr.bf16.vlgmr.msra.gmra.mrb[0].mxu0 %v236_v21  ;;  %1935 = vmatpush3.bf16.msra.mxu1 %v2216_v39  ;;  %v2223_v39 = vld [vmem:[#allocation5 + $0xb0] sm:$0xff]  }
  0x8c   : > { %1908 = vmatprep.mubr.bf16.mxu0 %v237_v22  ;;  %1953 = vmatpush3.bf16.msra.mxu0 %v2217_v40  ;;  %v2224_v40 = vld [vmem:[#allocation5 + $0xb8] sm:$0xff]  }
  0x8d   : > { %1954 = vmatprep.subr.bf16.mxu0 %v2218_v41 }
  0x90   : > { %1955 = vmatpush3.bf16.msra.mxu0 %v2218_v41  ;;  %v2225_v41 = vld [vmem:[#allocation5 + $0xc0] sm:$0xff]  }
  0x91   : > { %1956 = vmatprep.subr.bf16.mxu0 %v2219_v42  ;;  %1984 = vmatprep.subr.bf16.mxu1 %v2225_v41 }
  0x93   : > { %1909 = vmatmul.mubr.bf16.gmra.mrb[4].mxu0 %v238_v27 }
  0x94   : > { %1912 = vmatprep.mubr.bf16.mxu0 %v239_v28  ;;  %1957 = vmatpush3.bf16.msra.mxu0 %v2219_v42  ;;  %v2226_v42 = vld [vmem:[#allocation5 + $0xc8] sm:$0xff]  }
  0x95   : > { %1958 = vmatprep.subr.bf16.mxu0 %v2220_v43 }
  0x98   : > { %1959 = vmatpush3.bf16.msra.mxu0 %v2220_v43  ;;  %v2227_v43 = vld [vmem:[#allocation5 + $0xd0] sm:$0xff]  }
  0x99   : > { %1960 = vmatprep.subr.bf16.mxu0 %v2221_v44 }
  0x9b   : > { %1913 = vmatmul.mubr.bf16.gmra.mrb[8].mxu0 %v240_v33 }
  0x9c   : > { %1916 = vmatprep.mubr.bf16.mxu0 %v241_v34  ;;  %1961 = vmatpush3.bf16.msra.mxu0 %v2221_v44  ;;  %v2228_v44 = vld [vmem:[#allocation5 + $0xd8] sm:$0xff]  }
  0x9d   : > { %1962 = vmatprep.subr.bf16.mxu0 %v2222_v45 }
  0xa0   : > { %1963 = vmatpush3.bf16.msra.mxu0 %v2222_v45  ;;  %v2229_v45 = vld [vmem:[#allocation5 + $0xe0] sm:$0xff]  }
  0xa1   : > { %1964 = vmatprep.subr.bf16.mxu0 %v2223_v39 }
  0xa3   : > { %1917 = vmatmul.mubr.bf16.gmra.mrb[12].mxu0 %v242_v37 }
  0xa4   : > { %1965 = vmatpush3.bf16.msra.mxu0 %v2223_v39 }
  0xa5   : > { %1966 = vmatprep.subr.bf16.mxu0 %v2224_v40 }
  0xa8   : > { %1967 = vmatpush3.bf16.msra.mxu0 %v2224_v40  ;;  %v2231_v40 = vld [vmem:[#allocation5 + $0xf0] sm:$0xff]  }
 0x15e   : > { %v1906_v47 = vpop.f32.mrb[0].mxu0 }
 0x15f   : > { %v355_v48 = vadd.f32 %v1906_v47, %v1706_v46  ;;  %v346_v49 = vpop.f32.mrb[1].mxu0  ;;  %v1715_v47 = vld [vmem:[#allocation7 + $0x1] ss:$0 sm:$0xff] }
 0x160   : > { %v347_v50 = vadd.f32 %v1706_v46, %v346_v49  ;;  %v1907_v51 = vpop.f32.mrb[2].mxu0 }
 0x161   : > { %v358_v52 = vadd.f32 %v1907_v51, %v1706_v46  ;;  %v349_v53 = vpop.f32.mrb[3].mxu0  ;;  %v411_v55 = vmax.f32 %v355_v48, 0.0 }
 0x162   : > { %v350_v54 = vadd.f32 %v1706_v46, %v349_v53  ;;  %v409_v57 = vmax.f32 %v347_v50, 0.0 }
 0x163   : > { %v412_v56 = vmax.f32 %v358_v52, 0.0 }
 0x164   : > { %v410_v58 = vmax.f32 %v350_v54, 0.0 }
 0x165   : > { %v426_v59 = vpack.c.bf16 %v412_v56, %v411_v55 }
 0x166   : > { %v1910_v60 = vpop.f32.mrb[4].mxu0  ;;  %v425_v61 = vpack.c.bf16 %v410_v58, %v409_v57 }
 0x167   : > { %v371_v62 = vadd.f32 %v1910_v60, %v1706_v46  ;;  %v362_v63 = vpop.f32.mrb[5].mxu0 }
 0x168   : > { %v363_v0 = vadd.f32 %v1706_v46, %v362_v63  ;;  %v1911_v1 = vpop.f32.mrb[6].mxu0  ;;  %1936 = vmatprep.mubr.bf16.mxu1 %v425_v61 }
 0x169   : > { %v374_v2 = vadd.f32 %v1911_v1, %v1706_v46  ;;  %v365_v3 = vpop.f32.mrb[7].mxu0  ;;  %1937 = vmatmul.mubr.bf16.vlgmr.msra.gmra.mrb[0].mxu1 %v426_v59  ;;  %v415_v5 = vmax.f32 %v371_v62, 0.0 }
 0x16a   : > { %v366_v4 = vadd.f32 %v1706_v46, %v365_v3  ;;  %v413_v7 = vmax.f32 %v363_v0, 0.0  ;;  %1985 = vmatpush3.bf16.msra.mxu1 %v2225_v41  ;;  %v2232_v41 = vld [vmem:[#allocation5 + $0xf8] sm:$0xff]  }
 0x16b   : > { %v416_v6 = vmax.f32 %v374_v2, 0.0  ;;  %1986 = vmatprep.subr.bf16.mxu1 %v2226_v42 }
 0x16c   : > { %v414_v8 = vmax.f32 %v366_v4, 0.0 }
 0x16d   : > { %v428_v9 = vpack.c.bf16 %v416_v6, %v415_v5 }
 0x16e   : > { %v427_v10 = vpack.c.bf16 %v414_v8, %v413_v7  ;;  %v1914_v11 = vpop.f32.mrb[8].mxu0  ;;  %1987 = vmatpush3.bf16.msra.mxu1 %v2226_v42  ;;  %v2233_v42 = vld [vmem:[#allocation5 + $0x100] sm:$0xff]  }
 0x16f   : > { %v387_v12 = vadd.f32 %v1914_v11, %v1706_v46  ;;  %v378_v13 = vpop.f32.mrb[9].mxu0  ;;  %1988 = vmatprep.subr.bf16.mxu1 %v2227_v43  ;;  %2016 = vmatprep.subr.bf16.mxu0 %v2233_v42 }
 0x170   : > { %v379_v14 = vadd.f32 %v1706_v46, %v378_v13  ;;  %v1915_v15 = vpop.f32.mrb[10].mxu0  ;;  %1940 = vmatprep.mubr.bf16.mxu1 %v427_v10 }
 0x171   : > { %v390_v16 = vadd.f32 %v1915_v15, %v1706_v46  ;;  %v381_v17 = vpop.f32.mrb[11].mxu0  ;;  %1941 = vmatmul.mubr.bf16.gmra.mrb[4].mxu1 %v428_v9  ;;  %v419_v19 = vmax.f32 %v387_v12, 0.0 }
 0x172   : > { %v382_v18 = vadd.f32 %v1706_v46, %v381_v17  ;;  %v417_v21 = vmax.f32 %v379_v14, 0.0  ;;  %1989 = vmatpush3.bf16.msra.mxu1 %v2227_v43  ;;  %v2234_v43 = vld [vmem:[#allocation5 + $0x108] sm:$0xff]  }
 0x173   : > { %v420_v20 = vmax.f32 %v390_v16, 0.0  ;;  %1990 = vmatprep.subr.bf16.mxu1 %v2228_v44 }
 0x174   : > { %v418_v22 = vmax.f32 %v382_v18, 0.0 }
 0x175   : > { %v430_v23 = vpack.c.bf16 %v420_v20, %v419_v19 }
 0x176   : > { %v429_v24 = vpack.c.bf16 %v418_v22, %v417_v21  ;;  %v1918_v25 = vpop.f32.mrb[12].mxu0  ;;  %1991 = vmatpush3.bf16.msra.mxu1 %v2228_v44  ;;  %v2235_v44 = vld [vmem:[#allocation5 + $0x110] sm:$0xff]  }
 0x177   : > { %v403_v26 = vadd.f32 %v1918_v25, %v1706_v46  ;;  %v394_v27 = vpop.f32.mrb[13].mxu0  ;;  %1992 = vmatprep.subr.bf16.mxu1 %v2229_v45 }
 0x178   : > { %v395_v28 = vadd.f32 %v1706_v46, %v394_v27  ;;  %v1919_v29 = vpop.f32.mrb[14].mxu0  ;;  %1944 = vmatprep.mubr.bf16.mxu1 %v429_v24 }
 0x179   : > { %v406_v30 = vadd.f32 %v1919_v29, %v1706_v46  ;;  %v397_v31 = vpop.f32.mrb[15].mxu0  ;;  %1945 = vmatmul.mubr.bf16.gmra.mrb[8].mxu1 %v430_v23  ;;  %v423_v33 = vmax.f32 %v403_v26, 0.0 }
 0x17a   : > { %v398_v32 = vadd.f32 %v1706_v46, %v397_v31  ;;  %v421_v35 = vmax.f32 %v395_v28, 0.0  ;;  %v2230_v46 = vld [vmem:[#allocation5 + $0xe8] sm:$0xff]   ;;  %1993 = vmatpush3.bf16.msra.mxu1 %v2229_v45  ;;  %v2236_v45 = vld [vmem:[#allocation5 + $0x118] sm:$0xff]  }
 0x17b   : > { %v424_v34 = vmax.f32 %v406_v30, 0.0  ;;  %1994 = vmatprep.subr.bf16.mxu1 %v2230_v46 }
 0x17c   : > { %v422_v36 = vmax.f32 %v398_v32, 0.0 }
 0x17d   : > { %v432_v37 = vpack.c.bf16 %v424_v34, %v423_v33 }
 0x17e   : > { %v431_v38 = vpack.c.bf16 %v422_v36, %v421_v35  ;;  %1995 = vmatpush3.bf16.msra.mxu1 %v2230_v46  ;;  %v2237_v46 = vld [vmem:[#allocation5 + $0x120] sm:$0xff]  }
 0x17f   : > { %1996 = vmatprep.subr.bf16.mxu1 %v2231_v40 }
 0x180   : > { %1948 = vmatprep.mubr.bf16.mxu1 %v431_v38 }
 0x181   : > { %1949 = vmatmul.mubr.bf16.gmra.mrb[12].mxu1 %v432_v37 }
 0x182   : > { %1997 = vmatpush3.bf16.msra.mxu1 %v2231_v40 }
 0x183   : > { %1998 = vmatprep.subr.bf16.mxu1 %v2232_v41 }
 0x186   : > { %1999 = vmatpush3.bf16.msra.mxu1 %v2232_v41  ;;  %v2239_v41 = vld [vmem:[#allocation5 + $0x130] sm:$0xff]  }
 0x23c   : > { %v1938_v48 = vpop.f32.mrb[0].mxu1 }
 0x23d   : > { %v546_v49 = vadd.f32 %v1938_v48, %v1715_v47  ;;  %v537_v50 = vpop.f32.mrb[1].mxu1  ;;  %v1724_v48 = vld [vmem:[#allocation7 + $0x2] ss:$0 sm:$0xff] }
 0x23e   : > { %v538_v51 = vadd.f32 %v1715_v47, %v537_v50  ;;  %v1939_v52 = vpop.f32.mrb[2].mxu1 }
 0x23f   : > { %v549_v53 = vadd.f32 %v1939_v52, %v1715_v47  ;;  %v540_v54 = vpop.f32.mrb[3].mxu1  ;;  %v602_v56 = vmax.f32 %v546_v49, 0.0 }
 0x240   : > { %v541_v55 = vadd.f32 %v1715_v47, %v540_v54  ;;  %v600_v58 = vmax.f32 %v538_v51, 0.0 }
 0x241   : > { %v603_v57 = vmax.f32 %v549_v53, 0.0 }
 0x242   : > { %v601_v59 = vmax.f32 %v541_v55, 0.0 }
 0x243   : > { %v617_v60 = vpack.c.bf16 %v603_v57, %v602_v56 }
 0x244   : > { %v616_v61 = vpack.c.bf16 %v601_v59, %v600_v58  ;;  %v1942_v62 = vpop.f32.mrb[4].mxu1 }
 0x245   : > { %v562_v63 = vadd.f32 %v1942_v62, %v1715_v47  ;;  %v553_v0 = vpop.f32.mrb[5].mxu1 }
 0x246   : > { %v554_v1 = vadd.f32 %v1715_v47, %v553_v0  ;;  %v1943_v2 = vpop.f32.mrb[6].mxu1  ;;  %1968 = vmatprep.mubr.bf16.mxu0 %v616_v61 }
 0x247   : > { %v565_v3 = vadd.f32 %v1943_v2, %v1715_v47  ;;  %v556_v4 = vpop.f32.mrb[7].mxu1  ;;  %1969 = vmatmul.mubr.bf16.vlgmr.msra.gmra.mrb[16].mxu0 %v617_v60  ;;  %v606_v6 = vmax.f32 %v562_v63, 0.0 }
 0x248   : > { %v557_v5 = vadd.f32 %v1715_v47, %v556_v4  ;;  %v604_v8 = vmax.f32 %v554_v1, 0.0  ;;  %2017 = vmatpush3.bf16.msra.mxu0 %v2233_v42  ;;  %v2240_v42 = vld [vmem:[#allocation5 + $0x138] sm:$0xff]  }
 0x249   : > { %v607_v7 = vmax.f32 %v565_v3, 0.0  ;;  %2018 = vmatprep.subr.bf16.mxu0 %v2234_v43 }
 0x24a   : > { %v605_v9 = vmax.f32 %v557_v5, 0.0 }
 0x24b   : > { %v619_v10 = vpack.c.bf16 %v607_v7, %v606_v6 }
 0x24c   : > { %v618_v11 = vpack.c.bf16 %v605_v9, %v604_v8  ;;  %v1946_v12 = vpop.f32.mrb[8].mxu1  ;;  %2019 = vmatpush3.bf16.msra.mxu0 %v2234_v43  ;;  %v2241_v43 = vld [vmem:[#allocation5 + $0x140] sm:$0xff]  }
 0x24d   : > { %v578_v13 = vadd.f32 %v1946_v12, %v1715_v47  ;;  %v569_v14 = vpop.f32.mrb[9].mxu1  ;;  %2020 = vmatprep.subr.bf16.mxu0 %v2235_v44  ;;  %2048 = vmatprep.subr.bf16.mxu1 %v2241_v43 }
 0x24e   : > { %v570_v15 = vadd.f32 %v1715_v47, %v569_v14  ;;  %v1947_v16 = vpop.f32.mrb[10].mxu1  ;;  %1972 = vmatprep.mubr.bf16.mxu0 %v618_v11 }
 0x24f   : > { %v581_v17 = vadd.f32 %v1947_v16, %v1715_v47  ;;  %v572_v18 = vpop.f32.mrb[11].mxu1  ;;  %1973 = vmatmul.mubr.bf16.gmra.mrb[20].mxu0 %v619_v10  ;;  %v610_v20 = vmax.f32 %v578_v13, 0.0 }
 0x250   : > { %v573_v19 = vadd.f32 %v1715_v47, %v572_v18  ;;  %v608_v22 = vmax.f32 %v570_v15, 0.0  ;;  %2021 = vmatpush3.bf16.msra.mxu0 %v2235_v44  ;;  %v2242_v44 = vld [vmem:[#allocation5 + $0x148] sm:$0xff]  }
 0x251   : > { %v611_v21 = vmax.f32 %v581_v17, 0.0  ;;  %2022 = vmatprep.subr.bf16.mxu0 %v2236_v45 }
 0x252   : > { %v609_v23 = vmax.f32 %v573_v19, 0.0 }
 0x253   : > { %v621_v24 = vpack.c.bf16 %v611_v21, %v610_v20 }
 0x254   : > { %v620_v25 = vpack.c.bf16 %v609_v23, %v608_v22  ;;  %v1950_v26 = vpop.f32.mrb[12].mxu1  ;;  %2023 = vmatpush3.bf16.msra.mxu0 %v2236_v45  ;;  %v2243_v45 = vld [vmem:[#allocation5 + $0x150] sm:$0xff]  }
 0x255   : > { %v594_v27 = vadd.f32 %v1950_v26, %v1715_v47  ;;  %v585_v28 = vpop.f32.mrb[13].mxu1  ;;  %2024 = vmatprep.subr.bf16.mxu0 %v2237_v46 }
 0x256   : > { %v586_v29 = vadd.f32 %v1715_v47, %v585_v28  ;;  %v1951_v30 = vpop.f32.mrb[14].mxu1  ;;  %1976 = vmatprep.mubr.bf16.mxu0 %v620_v25 }
 0x257   : > { %v597_v31 = vadd.f32 %v1951_v30, %v1715_v47  ;;  %v588_v32 = vpop.f32.mrb[15].mxu1  ;;  %1977 = vmatmul.mubr.bf16.gmra.mrb[24].mxu0 %v621_v24  ;;  %v614_v34 = vmax.f32 %v594_v27, 0.0 }
 0x258   : > { %v589_v33 = vadd.f32 %v1715_v47, %v588_v32  ;;  %v612_v36 = vmax.f32 %v586_v29, 0.0  ;;  %v2238_v47 = vld [vmem:[#allocation5 + $0x128] sm:$0xff]   ;;  %2025 = vmatpush3.bf16.msra.mxu0 %v2237_v46  ;;  %v2244_v46 = vld [vmem:[#allocation5 + $0x158] sm:$0xff]  }
 0x259   : > { %v615_v35 = vmax.f32 %v597_v31, 0.0  ;;  %2026 = vmatprep.subr.bf16.mxu0 %v2238_v47 }
 0x25a   : > { %v613_v37 = vmax.f32 %v589_v33, 0.0 }
 0x25b   : > { %v623_v38 = vpack.c.bf16 %v615_v35, %v614_v34 }
 0x25c   : > { %v622_v39 = vpack.c.bf16 %v613_v37, %v612_v36  ;;  %2027 = vmatpush3.bf16.msra.mxu0 %v2238_v47  ;;  %v2245_v47 = vld [vmem:[#allocation5 + $0x160] sm:$0xff]  }
 0x25d   : > { %2028 = vmatprep.subr.bf16.mxu0 %v2239_v41 }
 0x25e   : > { %1980 = vmatprep.mubr.bf16.mxu0 %v622_v39 }
 0x25f   : > { %1981 = vmatmul.mubr.bf16.gmra.mrb[28].mxu0 %v623_v38 }
 0x260   : > { %2029 = vmatpush3.bf16.msra.mxu0 %v2239_v41 }
 0x261   : > { %2030 = vmatprep.subr.bf16.mxu0 %v2240_v42 }
 0x264   : > { %2031 = vmatpush3.bf16.msra.mxu0 %v2240_v42  ;;  %v2247_v42 = vld [vmem:[#allocation5 + $0x170] sm:$0xff]  }
 0x31a   : > { %v1970_v49 = vpop.f32.mrb[16].mxu0 }
 0x31b   : > { %v737_v50 = vadd.f32 %v1970_v49, %v1724_v48  ;;  %v728_v51 = vpop.f32.mrb[17].mxu0  ;;  %v1733_v49 = vld [vmem:[#allocation7 + $0x3] ss:$0 sm:$0xff] }
 0x31c   : > { %v729_v52 = vadd.f32 %v1724_v48, %v728_v51  ;;  %v1971_v53 = vpop.f32.mrb[18].mxu0 }
 0x31d   : > { %v740_v54 = vadd.f32 %v1971_v53, %v1724_v48  ;;  %v731_v55 = vpop.f32.mrb[19].mxu0  ;;  %v793_v57 = vmax.f32 %v737_v50, 0.0 }
 0x31e   : > { %v732_v56 = vadd.f32 %v1724_v48, %v731_v55  ;;  %v791_v59 = vmax.f32 %v729_v52, 0.0 }
 0x31f   : > { %v794_v58 = vmax.f32 %v740_v54, 0.0 }
 0x320   : > { %v792_v60 = vmax.f32 %v732_v56, 0.0 }
 0x321   : > { %v808_v61 = vpack.c.bf16 %v794_v58, %v793_v57 }
 0x322   : > { %v807_v62 = vpack.c.bf16 %v792_v60, %v791_v59  ;;  %v1974_v63 = vpop.f32.mrb[20].mxu0 }
 0x323   : > { %v753_v0 = vadd.f32 %v1974_v63, %v1724_v48  ;;  %v744_v1 = vpop.f32.mrb[21].mxu0 }
 0x324   : > { %v745_v2 = vadd.f32 %v1724_v48, %v744_v1  ;;  %v1975_v3 = vpop.f32.mrb[22].mxu0  ;;  %2000 = vmatprep.mubr.bf16.mxu1 %v807_v62 }
 0x325   : > { %v756_v4 = vadd.f32 %v1975_v3, %v1724_v48  ;;  %v747_v5 = vpop.f32.mrb[23].mxu0  ;;  %2001 = vmatmul.mubr.bf16.vlgmr.msra.gmra.mrb[16].mxu1 %v808_v61  ;;  %v797_v7 = vmax.f32 %v753_v0, 0.0 }
 0x326   : > { %v748_v6 = vadd.f32 %v1724_v48, %v747_v5  ;;  %v795_v9 = vmax.f32 %v745_v2, 0.0  ;;  %2049 = vmatpush3.bf16.msra.mxu1 %v2241_v43  ;;  %v2248_v43 = vld [vmem:[#allocation5 + $0x178] sm:$0xff]  }
 0x327   : > { %v798_v8 = vmax.f32 %v756_v4, 0.0  ;;  %2050 = vmatprep.subr.bf16.mxu1 %v2242_v44 }
 0x328   : > { %v796_v10 = vmax.f32 %v748_v6, 0.0 }
 0x329   : > { %v810_v11 = vpack.c.bf16 %v798_v8, %v797_v7 }
 0x32a   : > { %v809_v12 = vpack.c.bf16 %v796_v10, %v795_v9  ;;  %v1978_v13 = vpop.f32.mrb[24].mxu0  ;;  %2051 = vmatpush3.bf16.msra.mxu1 %v2242_v44  ;;  %v2249_v44 = vld [vmem:[#allocation5 + $0x180] sm:$0xff]  }
 0x32b   : > { %v769_v14 = vadd.f32 %v1978_v13, %v1724_v48  ;;  %v760_v15 = vpop.f32.mrb[25].mxu0  ;;  %2052 = vmatprep.subr.bf16.mxu1 %v2243_v45  ;;  %2080 = vmatprep.subr.bf16.mxu0 %v2249_v44 }
 0x32c   : > { %v761_v16 = vadd.f32 %v1724_v48, %v760_v15  ;;  %v1979_v17 = vpop.f32.mrb[26].mxu0  ;;  %2004 = vmatprep.mubr.bf16.mxu1 %v809_v12 }
 0x32d   : > { %v772_v18 = vadd.f32 %v1979_v17, %v1724_v48  ;;  %v763_v19 = vpop.f32.mrb[27].mxu0  ;;  %2005 = vmatmul.mubr.bf16.gmra.mrb[20].mxu1 %v810_v11  ;;  %v801_v21 = vmax.f32 %v769_v14, 0.0 }
 0x32e   : > { %v764_v20 = vadd.f32 %v1724_v48, %v763_v19  ;;  %v799_v23 = vmax.f32 %v761_v16, 0.0  ;;  %2053 = vmatpush3.bf16.msra.mxu1 %v2243_v45  ;;  %v2250_v45 = vld [vmem:[#allocation5 + $0x188] sm:$0xff]  }
 0x32f   : > { %v802_v22 = vmax.f32 %v772_v18, 0.0  ;;  %2054 = vmatprep.subr.bf16.mxu1 %v2244_v46 }
 0x330   : > { %v800_v24 = vmax.f32 %v764_v20, 0.0 }
 0x331   : > { %v812_v25 = vpack.c.bf16 %v802_v22, %v801_v21 }
 0x332   : > { %v811_v26 = vpack.c.bf16 %v800_v24, %v799_v23  ;;  %v1982_v27 = vpop.f32.mrb[28].mxu0  ;;  %2055 = vmatpush3.bf16.msra.mxu1 %v2244_v46  ;;  %v2251_v46 = vld [vmem:[#allocation5 + $0x190] sm:$0xff]  }
 0x333   : > { %v785_v28 = vadd.f32 %v1982_v27, %v1724_v48  ;;  %v776_v29 = vpop.f32.mrb[29].mxu0  ;;  %2056 = vmatprep.subr.bf16.mxu1 %v2245_v47 }
 0x334   : > { %v777_v30 = vadd.f32 %v1724_v48, %v776_v29  ;;  %v1983_v31 = vpop.f32.mrb[30].mxu0  ;;  %2008 = vmatprep.mubr.bf16.mxu1 %v811_v26 }
 0x335   : > { %v788_v32 = vadd.f32 %v1983_v31, %v1724_v48  ;;  %v779_v33 = vpop.f32.mrb[31].mxu0  ;;  %2009 = vmatmul.mubr.bf16.gmra.mrb[24].mxu1 %v812_v25  ;;  %v805_v35 = vmax.f32 %v785_v28, 0.0 }
 0x336   : > { %v780_v34 = vadd.f32 %v1724_v48, %v779_v33  ;;  %v803_v37 = vmax.f32 %v777_v30, 0.0  ;;  %v2246_v48 = vld [vmem:[#allocation5 + $0x168] sm:$0xff]   ;;  %2057 = vmatpush3.bf16.msra.mxu1 %v2245_v47  ;;  %v2649_v47 = vld [vmem:[#allocation5 + $0x198] sm:$0xff]  }
 0x337   : > { %v806_v36 = vmax.f32 %v788_v32, 0.0  ;;  %2058 = vmatprep.subr.bf16.mxu1 %v2246_v48 }
 0x338   : > { %v804_v38 = vmax.f32 %v780_v34, 0.0 }
 0x339   : > { %v814_v39 = vpack.c.bf16 %v806_v36, %v805_v35 }
 0x33a   : > { %v813_v40 = vpack.c.bf16 %v804_v38, %v803_v37  ;;  %2059 = vmatpush3.bf16.msra.mxu1 %v2246_v48  ;;  %v2652_v48 = vld [vmem:[#allocation5 + $0x1a0] sm:$0xff]  }
 0x33b   : > { %2060 = vmatprep.subr.bf16.mxu1 %v2247_v42 }
 0x33c   : > { %2012 = vmatprep.mubr.bf16.mxu1 %v813_v40 }
 0x33d   : > { %2013 = vmatmul.mubr.bf16.gmra.mrb[28].mxu1 %v814_v39 }
 0x33e   : > { %2061 = vmatpush3.bf16.msra.mxu1 %v2247_v42 }
 0x33f   : > { %2062 = vmatprep.subr.bf16.mxu1 %v2248_v43 }
 0x342   : > { %2063 = vmatpush3.bf16.msra.mxu1 %v2248_v43  ;;  %v2255_v43 = vld [vmem:[#allocation5 + $0x1b0] sm:$0xff]  }
 0x343   : > { %2112 = vmatprep.subr.bf16.mxu1 %v2249_v44 }
 0x3f8   : > { %v2002_v50 = vpop.f32.mrb[16].mxu1 }
 0x3f9   : > { %v928_v51 = vadd.f32 %v2002_v50, %v1733_v49  ;;  %v919_v52 = vpop.f32.mrb[17].mxu1  ;;  %v2661_v50 = vld [vmem:[#allocation7 + $0x4] ss:$0 sm:$0xff] }
 0x3fa   : > { %v920_v53 = vadd.f32 %v1733_v49, %v919_v52  ;;  %v2003_v54 = vpop.f32.mrb[18].mxu1 }
 0x3fb   : > { %v931_v55 = vadd.f32 %v2003_v54, %v1733_v49  ;;  %v922_v56 = vpop.f32.mrb[19].mxu1  ;;  %v984_v58 = vmax.f32 %v928_v51, 0.0 }
 0x3fc   : > { %v923_v57 = vadd.f32 %v1733_v49, %v922_v56  ;;  %v982_v60 = vmax.f32 %v920_v53, 0.0 }
 0x3fd   : > { %v985_v59 = vmax.f32 %v931_v55, 0.0 }
 0x3fe   : > { %v983_v61 = vmax.f32 %v923_v57, 0.0 }
 0x3ff   : > { %v999_v62 = vpack.c.bf16 %v985_v59, %v984_v58 }
 0x400   : > { %v998_v63 = vpack.c.bf16 %v983_v61, %v982_v60  ;;  %v2006_v0 = vpop.f32.mrb[20].mxu1 }
 0x401   : > { %v944_v1 = vadd.f32 %v2006_v0, %v1733_v49  ;;  %v935_v2 = vpop.f32.mrb[21].mxu1 }
 0x402   : > { %v936_v3 = vadd.f32 %v1733_v49, %v935_v2  ;;  %v2007_v4 = vpop.f32.mrb[22].mxu1  ;;  %2032 = vmatprep.mubr.bf16.mxu0 %v998_v63 }
 0x403   : > { %v947_v5 = vadd.f32 %v2007_v4, %v1733_v49  ;;  %v938_v6 = vpop.f32.mrb[23].mxu1  ;;  %2033 = vmatmul.mubr.bf16.vlgmr.msra.gmra.mrb[32].mxu0 %v999_v62  ;;  %v988_v8 = vmax.f32 %v944_v1, 0.0 }
 0x404   : > { %v939_v7 = vadd.f32 %v1733_v49, %v938_v6  ;;  %v986_v10 = vmax.f32 %v936_v3, 0.0  ;;  %2081 = vmatpush3.bf16.msra.mxu0 %v2249_v44 }
 0x405   : > { %v989_v9 = vmax.f32 %v947_v5, 0.0  ;;  %2082 = vmatprep.subr.bf16.mxu0 %v2250_v45 }
 0x406   : > { %v987_v11 = vmax.f32 %v939_v7, 0.0 }
 0x407   : > { %v1001_v12 = vpack.c.bf16 %v989_v9, %v988_v8 }
 0x408   : > { %v1000_v13 = vpack.c.bf16 %v987_v11, %v986_v10  ;;  %v2010_v14 = vpop.f32.mrb[24].mxu1  ;;  %2083 = vmatpush3.bf16.msra.mxu0 %v2250_v45 }
 0x409   : > { %v960_v15 = vadd.f32 %v2010_v14, %v1733_v49  ;;  %v951_v16 = vpop.f32.mrb[25].mxu1  ;;  %2084 = vmatprep.subr.bf16.mxu0 %v2251_v46 }
 0x40a   : > { %v952_v17 = vadd.f32 %v1733_v49, %v951_v16  ;;  %v2011_v18 = vpop.f32.mrb[26].mxu1  ;;  %2036 = vmatprep.mubr.bf16.mxu0 %v1000_v13 }
 0x40b   : > { %v963_v19 = vadd.f32 %v2011_v18, %v1733_v49  ;;  %v954_v20 = vpop.f32.mrb[27].mxu1  ;;  %2037 = vmatmul.mubr.bf16.gmra.mrb[36].mxu0 %v1001_v12  ;;  %v992_v22 = vmax.f32 %v960_v15, 0.0 }
 0x40c   : > { %v955_v21 = vadd.f32 %v1733_v49, %v954_v20  ;;  %v990_v24 = vmax.f32 %v952_v17, 0.0  ;;  %2085 = vmatpush3.bf16.msra.mxu0 %v2251_v46 }
 0x40d   : > { %v993_v23 = vmax.f32 %v963_v19, 0.0  ;;  %2086 = vmatprep.subr.bf16.mxu0 %v2649_v47 }
 0x40e   : > { %v991_v25 = vmax.f32 %v955_v21, 0.0 }
 0x40f   : > { %v1003_v26 = vpack.c.bf16 %v993_v23, %v992_v22 }
 0x410   : > { %v1002_v27 = vpack.c.bf16 %v991_v25, %v990_v24  ;;  %v2014_v28 = vpop.f32.mrb[28].mxu1  ;;  %2087 = vmatpush3.bf16.msra.mxu0 %v2649_v47 }
 0x411   : > { %v976_v29 = vadd.f32 %v2014_v28, %v1733_v49  ;;  %v967_v30 = vpop.f32.mrb[29].mxu1  ;;  %2088 = vmatprep.subr.bf16.mxu0 %v2652_v48 }
 0x412   : > { %v968_v31 = vadd.f32 %v1733_v49, %v967_v30  ;;  %v2015_v32 = vpop.f32.mrb[30].mxu1  ;;  %2040 = vmatprep.mubr.bf16.mxu0 %v1002_v27 }
 0x413   : > { %v979_v33 = vadd.f32 %v2015_v32, %v1733_v49  ;;  %v970_v34 = vpop.f32.mrb[31].mxu1  ;;  %2041 = vmatmul.mubr.bf16.gmra.mrb[40].mxu0 %v1003_v26  ;;  %v996_v36 = vmax.f32 %v976_v29, 0.0 }
 0x414   : > { %v971_v35 = vadd.f32 %v1733_v49, %v970_v34  ;;  %v994_v38 = vmax.f32 %v968_v31, 0.0  ;;  %v2656_v49 = vld [vmem:[#allocation5 + $0x1a8] sm:$0xff]   ;;  %2089 = vmatpush3.bf16.msra.mxu0 %v2652_v48 }
 0x415   : > { %v997_v37 = vmax.f32 %v979_v33, 0.0  ;;  %2090 = vmatprep.subr.bf16.mxu0 %v2656_v49 }
 0x416   : > { %v995_v39 = vmax.f32 %v971_v35, 0.0 }
 0x417   : > { %v1005_v40 = vpack.c.bf16 %v997_v37, %v996_v36 }
 0x418   : > { %v1004_v41 = vpack.c.bf16 %v995_v39, %v994_v38  ;;  %2091 = vmatpush3.bf16.msra.mxu0 %v2656_v49 }
 0x419   : > { %2092 = vmatprep.subr.bf16.mxu0 %v2255_v43 }
 0x41a   : > { %2044 = vmatprep.mubr.bf16.mxu0 %v1004_v41 }
 0x41b   : > { %2045 = vmatmul.mubr.bf16.gmra.mrb[44].mxu0 %v1005_v40 }
 0x41c   : > { %2093 = vmatpush3.bf16.msra.mxu0 %v2255_v43 }
 0x4d6   : > { %v2034_v51 = vpop.f32.mrb[32].mxu0 }
 0x4d7   : > { %v1119_v52 = vadd.f32 %v2034_v51, %v2661_v50  ;;  %v1110_v53 = vpop.f32.mrb[33].mxu0 }
 0x4d8   : > { %v1111_v54 = vadd.f32 %v2661_v50, %v1110_v53  ;;  %v2035_v55 = vpop.f32.mrb[34].mxu0 }
 0x4d9   : > { %v1122_v56 = vadd.f32 %v2035_v55, %v2661_v50  ;;  %v1113_v57 = vpop.f32.mrb[35].mxu0  ;;  %v1175_v59 = vmax.f32 %v1119_v52, 0.0 }
 0x4da   : > { %v1114_v58 = vadd.f32 %v2661_v50, %v1113_v57  ;;  %v1173_v61 = vmax.f32 %v1111_v54, 0.0 }
 0x4db   : > { %v1176_v60 = vmax.f32 %v1122_v56, 0.0 }
 0x4dc   : > { %v1174_v62 = vmax.f32 %v1114_v58, 0.0 }
 0x4dd   : > { %v1190_v63 = vpack.c.bf16 %v1176_v60, %v1175_v59 }
 0x4de   : > { %v1189_v0 = vpack.c.bf16 %v1174_v62, %v1173_v61  ;;  %v2038_v1 = vpop.f32.mrb[36].mxu0 }
 0x4df   : > { %v1135_v2 = vadd.f32 %v2038_v1, %v2661_v50  ;;  %v1126_v3 = vpop.f32.mrb[37].mxu0 }
 0x4e0   : > { %v1127_v4 = vadd.f32 %v2661_v50, %v1126_v3  ;;  %v2039_v5 = vpop.f32.mrb[38].mxu0  ;;  %2064 = vmatprep.mubr.bf16.mxu1 %v1189_v0 }
 0x4e1   : > { %v1138_v6 = vadd.f32 %v2039_v5, %v2661_v50  ;;  %v1129_v7 = vpop.f32.mrb[39].mxu0  ;;  %2065 = vmatmul.mubr.bf16.vlgmr.msra.gmra.mrb[32].mxu1 %v1190_v63  ;;  %v1179_v9 = vmax.f32 %v1135_v2, 0.0 }
 0x4e2   : > { %v1130_v8 = vadd.f32 %v2661_v50, %v1129_v7  ;;  %2120 = vmatpush3.bf16.msra.mxu1 %v2249_v44  ;;  %v1177_v11 = vmax.f32 %v1127_v4, 0.0  ;;  %v2256_v44 = vld [vmem:[#allocation5 + $0x1b8] sm:$0xff]  }
 0x4e3   : > { %v1180_v10 = vmax.f32 %v1138_v6, 0.0  ;;  %2113 = vmatprep.subr.bf16.mxu1 %v2250_v45  ;;  %2094 = vmatprep.subr.bf16.mxu0 %v2256_v44 }
 0x4e4   : > { %v1178_v12 = vmax.f32 %v1130_v8, 0.0  ;;  %2095 = vmatpush3.bf16.msra.mxu0 %v2256_v44 }
 0x4e5   : > { %v1192_v13 = vpack.c.bf16 %v1180_v10, %v1179_v9 }
 0x4e6   : > { %v1191_v14 = vpack.c.bf16 %v1178_v12, %v1177_v11  ;;  %v2042_v15 = vpop.f32.mrb[40].mxu0  ;;  %2121 = vmatpush3.bf16.msra.mxu1 %v2250_v45  ;;  %v1751_v45 = vld [vmem:[#allocation7 + $0x5] ss:$0 sm:$0xff] }
 0x4e7   : > { %v1151_v16 = vadd.f32 %v2042_v15, %v2661_v50  ;;  %v1142_v17 = vpop.f32.mrb[41].mxu0  ;;  %2114 = vmatprep.subr.bf16.mxu1 %v2251_v46 }
 0x4e8   : > { %v1143_v18 = vadd.f32 %v2661_v50, %v1142_v17  ;;  %v2043_v19 = vpop.f32.mrb[42].mxu0  ;;  %2068 = vmatprep.mubr.bf16.mxu1 %v1191_v14 }
 0x4e9   : > { %v1154_v20 = vadd.f32 %v2043_v19, %v2661_v50  ;;  %v1145_v21 = vpop.f32.mrb[43].mxu0  ;;  %2069 = vmatmul.mubr.bf16.gmra.mrb[36].mxu1 %v1192_v13  ;;  %v1183_v23 = vmax.f32 %v1151_v16, 0.0 }
 0x4ea   : > { %v1146_v22 = vadd.f32 %v2661_v50, %v1145_v21  ;;  %2122 = vmatpush3.bf16.msra.mxu1 %v2251_v46  ;;  %v1181_v25 = vmax.f32 %v1143_v18, 0.0 }
 0x4eb   : > { %v1184_v24 = vmax.f32 %v1154_v20, 0.0  ;;  %2115 = vmatprep.subr.bf16.mxu1 %v2649_v47 }
 0x4ec   : > { %v1182_v26 = vmax.f32 %v1146_v22, 0.0 }
 0x4ed   : > { %v1194_v27 = vpack.c.bf16 %v1184_v24, %v1183_v23 }
 0x4ee   : > { %v1193_v28 = vpack.c.bf16 %v1182_v26, %v1181_v25  ;;  %v2046_v29 = vpop.f32.mrb[44].mxu0  ;;  %2123 = vmatpush3.bf16.msra.mxu1 %v2649_v47 }
 0x4ef   : > { %v1167_v30 = vadd.f32 %v2046_v29, %v2661_v50  ;;  %v1158_v31 = vpop.f32.mrb[45].mxu0  ;;  %2116 = vmatprep.subr.bf16.mxu1 %v2652_v48 }
 0x4f0   : > { %v1159_v32 = vadd.f32 %v2661_v50, %v1158_v31  ;;  %v2047_v33 = vpop.f32.mrb[46].mxu0  ;;  %2072 = vmatprep.mubr.bf16.mxu1 %v1193_v28 }
 0x4f1   : > { %v1170_v34 = vadd.f32 %v2047_v33, %v2661_v50  ;;  %v1161_v35 = vpop.f32.mrb[47].mxu0  ;;  %2073 = vmatmul.mubr.bf16.gmra.mrb[40].mxu1 %v1194_v27  ;;  %v1187_v37 = vmax.f32 %v1167_v30, 0.0 }
 0x4f2   : > { %v1162_v36 = vadd.f32 %v2661_v50, %v1161_v35  ;;  %2124 = vmatpush3.bf16.msra.mxu1 %v2652_v48  ;;  %v1185_v39 = vmax.f32 %v1159_v32, 0.0 }
 0x4f3   : > { %v1188_v38 = vmax.f32 %v1170_v34, 0.0  ;;  %2117 = vmatprep.subr.bf16.mxu1 %v2656_v49 }
 0x4f4   : > { %v1186_v40 = vmax.f32 %v1162_v36, 0.0 }
 0x4f5   : > { %v1196_v41 = vpack.c.bf16 %v1188_v38, %v1187_v37  ;;  %v1760_v38 = vld [vmem:[#allocation7 + $0x6] ss:$0 sm:$0xff] }
 0x4f6   : > { %v1195_v42 = vpack.c.bf16 %v1186_v40, %v1185_v39  ;;  %2125 = vmatpush3.bf16.msra.mxu1 %v2656_v49 }
 0x4f7   : > { %2118 = vmatprep.subr.bf16.mxu1 %v2255_v43 }
 0x4f8   : > { %2076 = vmatprep.mubr.bf16.mxu1 %v1195_v42 }
 0x4f9   : > { %2077 = vmatmul.mubr.bf16.gmra.mrb[44].mxu1 %v1196_v41 }
 0x4fa   : > { %2126 = vmatpush3.bf16.msra.mxu1 %v2255_v43 }
 0x4fb   : > { %2119 = vmatprep.subr.bf16.mxu1 %v2256_v44 }
 0x4fe   : > { %2127 = vmatpush3.bf16.msra.mxu1 %v2256_v44 }
 0x5b4   : > { %v2066_v46 = vpop.f32.mrb[32].mxu1 }
 0x5b5   : > { %v1310_v47 = vadd.f32 %v2066_v46, %v1751_v45  ;;  %v1301_v48 = vpop.f32.mrb[33].mxu1 }
 0x5b6   : > { %v1302_v50 = vadd.f32 %v1751_v45, %v1301_v48  ;;  %v2067_v51 = vpop.f32.mrb[34].mxu1 }
 0x5b7   : > { %v1313_v52 = vadd.f32 %v2067_v51, %v1751_v45  ;;  %v1304_v49 = vpop.f32.mrb[35].mxu1  ;;  %v1366_v54 = vmax.f32 %v1310_v47, 0.0 }
 0x5b8   : > { %v1305_v53 = vadd.f32 %v1751_v45, %v1304_v49  ;;  %v1364_v56 = vmax.f32 %v1302_v50, 0.0 }
 0x5b9   : > { %v1367_v55 = vmax.f32 %v1313_v52, 0.0 }
 0x5ba   : > { %v1365_v57 = vmax.f32 %v1305_v53, 0.0 }
 0x5bb   : > { %v1381_v58 = vpack.c.bf16 %v1367_v55, %v1366_v54 }
 0x5bc   : > { %v1380_v59 = vpack.c.bf16 %v1365_v57, %v1364_v56  ;;  %v2070_v60 = vpop.f32.mrb[36].mxu1 }
 0x5bd   : > { %v1326_v61 = vadd.f32 %v2070_v60, %v1751_v45  ;;  %v1317_v62 = vpop.f32.mrb[37].mxu1 }
 0x5be   : > { %v1318_v63 = vadd.f32 %v1751_v45, %v1317_v62  ;;  %v2071_v0 = vpop.f32.mrb[38].mxu1  ;;  %2096 = vmatprep.mubr.bf16.mxu0 %v1380_v59 }
 0x5bf   : > { %v1329_v1 = vadd.f32 %v2071_v0, %v1751_v45  ;;  %v1320_v2 = vpop.f32.mrb[39].mxu1  ;;  %2097 = vmatmul.mubr.bf16.vlgmr.msra.gmra.mrb[48].mxu0 %v1381_v58  ;;  %v1370_v4 = vmax.f32 %v1326_v61, 0.0 }
 0x5c0   : > { %v1321_v3 = vadd.f32 %v1751_v45, %v1320_v2  ;;  %v1368_v6 = vmax.f32 %v1318_v63, 0.0 }
 0x5c1   : > { %v1371_v5 = vmax.f32 %v1329_v1, 0.0 }
 0x5c2   : > { %v1369_v7 = vmax.f32 %v1321_v3, 0.0 }
 0x5c3   : > { %v1383_v8 = vpack.c.bf16 %v1371_v5, %v1370_v4 }
 0x5c4   : > { %v1382_v9 = vpack.c.bf16 %v1369_v7, %v1368_v6  ;;  %v2074_v10 = vpop.f32.mrb[40].mxu1 }
 0x5c5   : > { %v1342_v11 = vadd.f32 %v2074_v10, %v1751_v45  ;;  %v1333_v12 = vpop.f32.mrb[41].mxu1 }
 0x5c6   : > { %v1334_v13 = vadd.f32 %v1751_v45, %v1333_v12  ;;  %v2075_v14 = vpop.f32.mrb[42].mxu1  ;;  %2100 = vmatprep.mubr.bf16.mxu0 %v1382_v9 }
 0x5c7   : > { %v1345_v15 = vadd.f32 %v2075_v14, %v1751_v45  ;;  %v1336_v16 = vpop.f32.mrb[43].mxu1  ;;  %2101 = vmatmul.mubr.bf16.gmra.mrb[52].mxu0 %v1383_v8  ;;  %v1374_v18 = vmax.f32 %v1342_v11, 0.0 }
 0x5c8   : > { %v1337_v17 = vadd.f32 %v1751_v45, %v1336_v16  ;;  %v1372_v20 = vmax.f32 %v1334_v13, 0.0 }
 0x5c9   : > { %v1375_v19 = vmax.f32 %v1345_v15, 0.0 }
 0x5ca   : > { %v1373_v21 = vmax.f32 %v1337_v17, 0.0 }
 0x5cb   : > { %v1385_v22 = vpack.c.bf16 %v1375_v19, %v1374_v18 }
 0x5cc   : > { %v1384_v23 = vpack.c.bf16 %v1373_v21, %v1372_v20  ;;  %v2078_v24 = vpop.f32.mrb[44].mxu1 }
 0x5cd   : > { %v1358_v25 = vadd.f32 %v2078_v24, %v1751_v45  ;;  %v1349_v26 = vpop.f32.mrb[45].mxu1 }
 0x5ce   : > { %v1350_v27 = vadd.f32 %v1751_v45, %v1349_v26  ;;  %v2079_v28 = vpop.f32.mrb[46].mxu1  ;;  %2104 = vmatprep.mubr.bf16.mxu1 %v1384_v23 }
 0x5cf   : > { %v1361_v29 = vadd.f32 %v2079_v28, %v1751_v45  ;;  %v1352_v30 = vpop.f32.mrb[47].mxu1  ;;  %2105 = vmatmul.mubr.bf16.vlgmr.msra.gmra.mrb[48].mxu1 %v1385_v22  ;;  %v1378_v32 = vmax.f32 %v1358_v25, 0.0 }
 0x5d0   : > { %v1353_v31 = vadd.f32 %v1751_v45, %v1352_v30  ;;  %v1376_v34 = vmax.f32 %v1350_v27, 0.0 }
 0x5d1   : > { %v1379_v33 = vmax.f32 %v1361_v29, 0.0 }
 0x5d2   : > { %v1377_v35 = vmax.f32 %v1353_v31, 0.0 }
 0x5d3   : > { %v1387_v36 = vpack.c.bf16 %v1379_v33, %v1378_v32 }
 0x5d4   : > { %v1386_v37 = vpack.c.bf16 %v1377_v35, %v1376_v34 }
 0x5d6   : > { %2108 = vmatprep.mubr.bf16.mxu1 %v1386_v37 }
 0x5d7   : > { %2109 = vmatmul.mubr.bf16.gmra.mrb[52].mxu1 %v1387_v36 }
 0x692   : > { %v2098_v39 = vpop.f32.mrb[48].mxu0 }
 0x693   : > { %v1501_v40 = vadd.f32 %v2098_v39, %v1760_v38  ;;  %v1492_v41 = vpop.f32.mrb[49].mxu0 }
 0x694   : > { %v1493_v42 = vadd.f32 %v1760_v38, %v1492_v41  ;;  %v2099_v43 = vpop.f32.mrb[50].mxu0 }
 0x695   : > { %v1557_v44 = vmax.f32 %v1501_v40, 0.0  ;;  %v1504_v46 = vadd.f32 %v2099_v43, %v1760_v38  ;;  %v1495_v47 = vpop.f32.mrb[51].mxu0 }
 0x696   : > { %v1555_v48 = vmax.f32 %v1493_v42, 0.0  ;;  %v1496_v45 = vadd.f32 %v1760_v38, %v1495_v47 }
 0x697   : > { %1573 = vst [vmem:[%s2687_s18 + $0x10] sm:$0xff] %v1557_v44  ;;  %v1558_v50 = vmax.f32 %v1504_v46, 0.0 }
 0x698   : > { %1571 = vst [vmem:[%s2687_s18] sm:$0xff] %v1555_v48  ;;  %v1556_v51 = vmax.f32 %v1496_v45, 0.0 }
 0x699   : > { %1574 = vst [vmem:[%s2687_s18 + $0x18] sm:$0xff] %v1558_v50 }
 0x69a   : > { %1572 = vst [vmem:[%s2687_s18 + $0x8] sm:$0xff] %v1556_v51  ;;  %v2102_v52 = vpop.f32.mrb[52].mxu0 }
 0x69b   : > { %v1517_v49 = vadd.f32 %v2102_v52, %v1760_v38  ;;  %v1508_v53 = vpop.f32.mrb[53].mxu0 }
 0x69c   : > { %v1509_v54 = vadd.f32 %v1760_v38, %v1508_v53  ;;  %v2103_v55 = vpop.f32.mrb[54].mxu0 }
 0x69d   : > { %v1561_v56 = vmax.f32 %v1517_v49, 0.0  ;;  %v1520_v57 = vadd.f32 %v2103_v55, %v1760_v38  ;;  %v1511_v58 = vpop.f32.mrb[55].mxu0 }
 0x69e   : > { %v1559_v59 = vmax.f32 %v1509_v54, 0.0  ;;  %v1512_v60 = vadd.f32 %v1760_v38, %v1511_v58 }
 0x69f   : > { %1577 = vst [vmem:[%s2687_s18 + $0x30] sm:$0xff] %v1561_v56  ;;  %v1562_v61 = vmax.f32 %v1520_v57, 0.0 }
 0x6a0   : > { %1575 = vst [vmem:[%s2687_s18 + $0x20] sm:$0xff] %v1559_v59  ;;  %v1560_v62 = vmax.f32 %v1512_v60, 0.0 }
 0x6a1   : > { %1578 = vst [vmem:[%s2687_s18 + $0x38] sm:$0xff] %v1562_v61 }
 0x6a2   : > { %1576 = vst [vmem:[%s2687_s18 + $0x28] sm:$0xff] %v1560_v62  ;;  %v2106_v63 = vpop.f32.mrb[48].mxu1 }
 0x6a3   : > { %v1533_v0 = vadd.f32 %v2106_v63, %v1760_v38  ;;  %v1524_v1 = vpop.f32.mrb[49].mxu1 }
 0x6a4   : > { %v1525_v2 = vadd.f32 %v1760_v38, %v1524_v1  ;;  %v2107_v3 = vpop.f32.mrb[50].mxu1 }
 0x6a5   : > { %v1565_v4 = vmax.f32 %v1533_v0, 0.0  ;;  %v1536_v5 = vadd.f32 %v2107_v3, %v1760_v38  ;;  %v1527_v6 = vpop.f32.mrb[51].mxu1 }
 0x6a6   : > { %v1563_v7 = vmax.f32 %v1525_v2, 0.0  ;;  %v1528_v8 = vadd.f32 %v1760_v38, %v1527_v6 }
 0x6a7   : > { %1581 = vst [vmem:[%s2687_s18 + $0x50] sm:$0xff] %v1565_v4  ;;  %v1566_v9 = vmax.f32 %v1536_v5, 0.0 }
 0x6a8   : > { %1579 = vst [vmem:[%s2687_s18 + $0x40] sm:$0xff] %v1563_v7  ;;  %v1564_v10 = vmax.f32 %v1528_v8, 0.0 }
 0x6a9   : > { %1582 = vst [vmem:[%s2687_s18 + $0x58] sm:$0xff] %v1566_v9 }
 0x6aa   : > { %1580 = vst [vmem:[%s2687_s18 + $0x48] sm:$0xff] %v1564_v10  ;;  %v2110_v11 = vpop.f32.mrb[52].mxu1 }
 0x6ab   : > { %v1549_v12 = vadd.f32 %v2110_v11, %v1760_v38  ;;  %v1540_v13 = vpop.f32.mrb[53].mxu1 }
 0x6ac   : > { %v1541_v14 = vadd.f32 %v1760_v38, %v1540_v13  ;;  %v2111_v15 = vpop.f32.mrb[54].mxu1 }
 0x6ad   : > { %v1569_v16 = vmax.f32 %v1549_v12, 0.0  ;;  %v1552_v17 = vadd.f32 %v2111_v15, %v1760_v38  ;;  %v1543_v18 = vpop.f32.mrb[55].mxu1 }
 0x6ae   : > { %v1567_v19 = vmax.f32 %v1541_v14, 0.0  ;;  %v1544_v20 = vadd.f32 %v1760_v38, %v1543_v18 }
 0x6af   : > { %1585 = vst [vmem:[%s2687_s18 + $0x70] sm:$0xff] %v1569_v16  ;;  %v1570_v21 = vmax.f32 %v1552_v17, 0.0 }
 0x6b0   : > { %1583 = vst [vmem:[%s2687_s18 + $0x60] sm:$0xff] %v1567_v19  ;;  %v1568_v22 = vmax.f32 %v1544_v20, 0.0 }
 0x6b1   : > { %1586 = vst [vmem:[%s2687_s18 + $0x78] sm:$0xff] %v1570_v21 }
 0x6b2   : > { %1584 = vst [vmem:[%s2687_s18 + $0x68] sm:$0xff] %v1568_v22 }
 0x6b3   : > { %2356 = shalt.err (!%p2353_p2)
}
 0x6b4   : > { %s2357_s25 = scalar_lea.hbm %s2707_s27, 2048  ;;  %s2361_s21 = scalar_lea.hbm %s2759_s3, 4096 }
 0x6b5   : > { %p2358_p13 = scmp.ne.s32.totalorder %s2707_s27, %s2357_s25  ;;  %p2362_p4 = scmp.lt.u32.totalorder %s2707_s27, %s2759_s3 }
 0x6b6   : > { %p2363_p5 = scmp.lt.u32.totalorder %s2361_s21, %s2357_s25  ;;  %p2365_p11 = scmp.lt.u32.totalorder %s2357_s25, %s2707_s27 }
 0x6b7   : > { %p2359_p6 = pnand %p2358_p13, %p2773_p0 }
 0x6b8   : > { %p2364_p8 = por %p2363_p5, %p2362_p4 }
 0x6b9   : > { %p2360_p10 = pneg %p2359_p6 }
 0x6ba   : > { %p2366_p1 = por %p2365_p11, %p2364_p8 }
 0x6bc   : > { %p2367_p3 = pnand %p2366_p1, %p2360_p10 }
 0x6be   : > { %2370 = shalt.err (!%p2367_p3)
}
 0x6bf   : > { %s2423_s30 = smov 128   ;;  %s2424_s18 = smov 8  }
 0x6c0   : > { %2138 = dma.vmem_to_hbm [thread:$0]  (%p2773_p0), %s2709_s17, 2048, %s2707_s27, %s1588_s16, %s2423_s30, %s2423_s30, %s2424_s18  }
 0x6c1 PF: > { %s1616_s20 = sand.u32 1, %s2401_s12   ;;  %p2774_p7 = scmp.ne.s32.totalorder %s2764_s19, 0 }
 0x6c2   : > { %p2775_p9 = scmp.ge.s32.totalorder %s2413_s15, 2  ;;  %s1617_s24 = scalar_lea.sflag [#allocation4], %s1616_s20 }
 0x6c4   : > { %p2152_p12 = pnand %p2775_p9, %p2774_p7 }
 0x6c6   : > { %2396 = dma.done.wait (!%p2152_p12), %s1617_s24, 2048  }
 0x6c7   : > { %2398 = vsyncadd (!%p2152_p12), %s1617_s24, 4294965248  ;;  %p17_p2 = scmp.ge.s32.totalorder %s2555_s4, 4   ;;  %s2776_s12 = smov %s2405_s13 }
 0x6c8   : > { %s2777_s13 = smov %s2409_s14  ;;  %s2778_s14 = smov %s2571_s7 }
 0x6c9   : > { %s2779_s15 = smov %s2555_s4  ;;  %19 = sbr.rel (!%p17_p2) target bundleno = 6 (0x6), region = 91 }
 0x6d0   :  { %1622 = vsyncpa [#allocation3], 1 }
 0x6d1   :  { %1624 = vsyncpa [#allocation3 + $0x1], 1 }
 0x6d2   :  { %1625 = vsyncpa [#allocation6], 1 }
 0x6d3   :  { %1626 = vsyncpa [#allocation4], 1 }
 0x6d4   :  { %1628 = vsyncpa [#allocation4 + $0x1], 1 }

</bundles_post_ra>
